<compile_context>
chip_gen: v7x
topology: tpu7x:2x2x1
jax: 0.10.0
libtpu: 0.0.40
codegen_flags: <defaults>
</compile_context>

<pallas_src>
import numpy as np

import jax
import jax.numpy as jnp
from jax import lax
from jax.experimental import pallas as pl
from jax.experimental.pallas import tpu as pltpu

LN_EPS = 1e-5
_MIB = 1024 * 1024


def _make_pde_kernel(transpose_input_side, matmul_dtype):
    """Builds the kernel body with static config baked in.

    transpose_input_side: True  -> transpose the C-wide z_ji tile before LN+linear
                          False -> transpose the nb-wide logits after LN+linear
    matmul_dtype: dtype fed to the MXU (accumulation is always f32).
    """

    def kernel(ii_ref, jj_ref, z_ij_ref, z_ji_ref, w_ref, b_ref, out_ref, sym_ref):
        # Grid step (b, t, s); t indexes an upper-triangular tile pair
        # (ii[t], jj[t]); s=0 writes block (i,j), s=1 mirrors to block (j,i).
        s = pl.program_id(2)
        t = pl.program_id(1)
        is_diag = ii_ref[t] == jj_ref[t]

        def ln_linear(x):  # (tq, tq, C) native dtype -> (tq, tq, nb) f32
            x = x.astype(jnp.float32)                      # up-cast post-DMA
            mu = jnp.mean(x, axis=-1, keepdims=True)
            var = jnp.mean(jnp.square(x - mu), axis=-1, keepdims=True)
            xn = (x - mu) * lax.rsqrt(var + LN_EPS)
            # Single flattened 2-D MXU dot (M = tq*tq); W stays stationary.
            # The collapse of the two leading dims keeps the lane dim (C)
            # unchanged, so it is layout-preserving.
            xf = xn.astype(matmul_dtype).reshape(-1, xn.shape[-1])
            y = jnp.dot(xf, w_ref[...], preferred_element_type=jnp.float32)
            return y.reshape(xn.shape[0], xn.shape[1], -1) + b_ref[...]

        @pl.when(s == 0)
        def _():
            l_ij = ln_linear(z_ij_ref[...])                # (tq, tq, nb)

            @pl.when(is_diag)
            def _():
                # z[b,j,i] == z[b,i,j]: reuse l_ij, single nb-wide transpose.
                # s==1 is skipped for diagonal pairs, so sym_ref is not needed.
                sym = l_ij + jnp.transpose(l_ij, (1, 0, 2))
                out_ref[...] = sym.astype(out_ref.dtype)

            @pl.when(jnp.logical_not(is_diag))
            def _():
                if transpose_input_side:
                    # Transpose the narrower (C-wide) operand; LN and the
                    # linear commute with the leading-axes transpose, so this
                    # directly yields l_ji^T.
                    l_ji_t = ln_linear(jnp.transpose(z_ji_ref[...], (1, 0, 2)))
                else:
                    l_ji_t = jnp.transpose(ln_linear(z_ji_ref[...]), (1, 0, 2))
                sym = l_ij + l_ji_t
                sym_ref[...] = sym
                out_ref[...] = sym.astype(out_ref.dtype)

        # Mirror block out[b,j,i] = sym^T.  Skipped on diagonal pairs: the
        # output block index is unchanged from s==0, so the resident output
        # buffer already holds the (symmetric) tile.
        @pl.when(jnp.logical_and(s == 1, jnp.logical_not(is_diag)))
        def _():
            out_ref[...] = jnp.transpose(sym_ref[...], (1, 0, 2)).astype(out_ref.dtype)

    return kernel


def _select_tile_and_vmem(N, C, nb, z_bytes, out_bytes, tq_req):
    """Pick the largest valid residue tile that fits the per-generation VMEM
    budget, and derive vmem_limit_bytes from the actual footprint."""
    try:
        info = pltpu.get_tpu_info()
        cap = getattr(info, "vmem_capacity_bytes", None) or 64 * _MIB
    except Exception:  # pragma: no cover - conservative fallback off-TPU
        cap = 64 * _MIB
    # v7x (64 MiB physical): leave ~16 MiB for compiler-internal scratch.
    # v5e/v6e (128 MiB physical): allow up to 96 MiB scoped.
    budget = int(cap * 0.75) if cap <= 64 * _MIB else 96 * _MIB
    headroom = 4 * _MIB

    def footprint(t):
        z_bufs = 2 * 2 * t * t * C * z_bytes       # two z streams, double-buffered
        out_bufs = 2 * t * t * nb * out_bytes      # output, double-buffered
        scratch = t * t * nb * 4                   # f32 sym scratch
        params = 2 * (C * nb + nb) * 4             # W' + b' (double-buffered)
        return z_bufs + out_bufs + scratch + params

    start = max(1, min(tq_req, N))
    candidates = [d for d in range(start, 0, -1)
                  if N % d == 0 and (d % 8 == 0 or d == N)]
    if not candidates:
        candidates = [N]
    tq = candidates[-1]
    for cand in candidates:
        if footprint(cand) + headroom <= budget:
            tq = cand
            break
    vmem_limit = int(min(budget, max(footprint(tq) + headroom, 32 * _MIB)))
    return tq, vmem_limit


def pde_head(z, gamma, beta, w, b, *, tq=128, out_dtype=None, matmul_dtype=None):
    """z: [B, N, N, C_s] (any float dtype) -> symmetrized logits [B, N, N, no_bins]."""
    B, N, N2, C = z.shape
    assert N == N2
    nb = w.shape[1]

    out_dtype = jnp.dtype(out_dtype) if out_dtype is not None else jnp.dtype(jnp.float32)
    # Default MXU precision is f32 to match the PyTorch module's fp32 compute
    # path; pass jnp.bfloat16 to opt into bf16 MXU operands.
    matmul_dtype = (jnp.dtype(matmul_dtype) if matmul_dtype is not None
                    else jnp.dtype(jnp.float32))

    # NOTE: z stays in its native dtype in HBM (no wrapper-side f32 copy); the
    # kernel up-casts each tile to f32 right after the DMA.

    # Fold LayerNorm affine into the Linear (exact in f32):
    #   (xn * gamma + beta) @ W + b == xn @ (gamma[:,None] * W) + (beta @ W + b)
    gamma32 = gamma.astype(jnp.float32)
    beta32 = beta.astype(jnp.float32)
    w32 = w.astype(jnp.float32)
    b32 = b.astype(jnp.float32)
    wp = (gamma32[:, None] * w32).astype(matmul_dtype)    # (C, nb)
    bp = (beta32 @ w32 + b32).reshape(1, 1, nb)           # (1, 1, nb), f32

    tq, vmem_limit = _select_tile_and_vmem(
        N, C, nb, jnp.dtype(z.dtype).itemsize, out_dtype.itemsize, tq)

    # Upper-triangular (inclusive) tile-pair enumeration.
    nblk = N // tq
    pairs = [(i, j) for i in range(nblk) for j in range(i, nblk)]
    ii = jnp.asarray(np.array([p[0] for p in pairs], dtype=np.int32))
    jj = jnp.asarray(np.array([p[1] for p in pairs], dtype=np.int32))
    n_pairs = len(pairs)

    grid = (B, n_pairs, 2)

    def z_ij_map(bb, t, s, ii_r, jj_r):
        return (bb, ii_r[t], jj_r[t], 0)

    def z_ji_map(bb, t, s, ii_r, jj_r):
        return (bb, jj_r[t], ii_r[t], 0)

    def out_map(bb, t, s, ii_r, jj_r):
        i = ii_r[t]
        j = jj_r[t]
        # s == 0 -> (i, j) block ; s == 1 -> (j, i) block
        return (bb, i + s * (j - i), j + s * (i - j), 0)

    kernel = _make_pde_kernel(transpose_input_side=(C < nb),
                              matmul_dtype=matmul_dtype)

    return pl.pallas_call(
        kernel,
        out_shape=jax.ShapeDtypeStruct((B, N, N, nb), out_dtype),
        grid_spec=pltpu.PrefetchScalarGridSpec(
            num_scalar_prefetch=2,
            grid=grid,
            in_specs=[
                pl.BlockSpec((None, tq, tq, C), z_ij_map),
                pl.BlockSpec((None, tq, tq, C), z_ji_map),
                pl.BlockSpec((C, nb), lambda bb, t, s, ii_r, jj_r: (0, 0)),
                pl.BlockSpec((1, 1, nb), lambda bb, t, s, ii_r, jj_r: (0, 0, 0)),
            ],
            out_specs=pl.BlockSpec((None, tq, tq, nb), out_map),
            scratch_shapes=[pltpu.VMEM((tq, tq, nb), jnp.float32)],
        ),
        compiler_params=pltpu.CompilerParams(
            # b / pair axes shard across TensorCores (v7x megacore); the s axis
            # carries the sym scratch tile and must stay sequential.
            dimension_semantics=("parallel", "parallel", "arbitrary"),
            vmem_limit_bytes=vmem_limit),
    )(ii, jj, z, z, wp, bp)


def pde_head_reference(z, gamma, beta, w, b):
    z = z.astype(jnp.float32)
    mu = jnp.mean(z, axis=-1, keepdims=True)
    var = jnp.mean(jnp.square(z - mu), axis=-1, keepdims=True)
    zn = (z - mu) / jnp.sqrt(var + LN_EPS) * gamma + beta
    logits = zn @ w + b
    return logits + jnp.swapaxes(logits, -2, -3)


if __name__ == "__main__":
    B, N, C_S, NO_BINS = 2, 16, 32, 64

    key = jax.random.PRNGKey(0)
    k_z, k_w, k_g, k_b, k_bias = jax.random.split(key, 5)

    z = jax.random.normal(k_z, (B, N, N, C_S), dtype=jnp.float32)
    gamma = 1.0 + 0.1 * jax.random.normal(k_g, (C_S,), dtype=jnp.float32)
    beta = 0.1 * jax.random.normal(k_b, (C_S,), dtype=jnp.float32)
    w = 0.02 * jax.random.normal(k_w, (C_S, NO_BINS), dtype=jnp.float32)
    b = 0.01 * jax.random.normal(k_bias, (NO_BINS,), dtype=jnp.float32)

    ref = pde_head_reference(z, gamma, beta, w, b)

    # f32 path; tq=8 at N=16 gives a 2x2 tile grid -> exercises both the
    # diagonal (single LN+matmul, skipped mirror) and off-diagonal
    # (transposed-input + mirror-write) code paths.
    out = jax.block_until_ready(pde_head(z, gamma, beta, w, b, tq=8))
    assert out.shape == (B, N, N, NO_BINS)
    assert jnp.allclose(out, ref, atol=1e-4, rtol=1e-4), "f32 mismatch vs reference"

    # Default tile selection (tq -> N: single diagonal pair) + derived VMEM limit.
    out_full = jax.block_until_ready(pde_head(z, gamma, beta, w, b))
    assert jnp.allclose(out_full, ref, atol=1e-4, rtol=1e-4), "full-tile mismatch"

    # Native 16-bit input path: bf16 z stays in HBM (no wrapper up-cast),
    # bf16 MXU operands, bf16 output.
    z16 = z.astype(jnp.bfloat16)
    ref16 = pde_head_reference(z16.astype(jnp.float32), gamma, beta, w, b)
    out16 = jax.block_until_ready(
        pde_head(z16, gamma, beta, w, b, tq=8,
                 out_dtype=jnp.bfloat16, matmul_dtype=jnp.bfloat16))
    assert out16.dtype == jnp.bfloat16
    assert jnp.allclose(out16.astype(jnp.float32), ref16, atol=2e-2, rtol=2e-2), \
        "bf16 mismatch vs reference"

    print("KERNEL_OK")
</pallas_src>

<mosaic_0001>
module attributes {stable_mosaic.version = 11 : i64} {
  func.func @kernel(%arg0: i32, %arg1: i32, %arg2: i32, %arg3: memref<3xi32, #tpu.memory_space<smem>>, %arg4: memref<3xi32, #tpu.memory_space<smem>>, %arg5: memref<1x8x8x32xf32, #tpu.memory_space<vmem>>, %arg6: memref<1x8x8x32xf32, #tpu.memory_space<vmem>>, %arg7: memref<32x64xf32, #tpu.memory_space<vmem>>, %arg8: memref<1x1x64xf32, #tpu.memory_space<vmem>>, %arg9: memref<1x8x8x64xf32, #tpu.memory_space<vmem>>, %arg10: memref<8x8x64xf32, #tpu.memory_space<vmem>>) attributes {dimension_semantics = [#tpu.dimension_semantics<parallel>, #tpu.dimension_semantics<parallel>, #tpu.dimension_semantics<arbitrary>], iteration_bounds = array<i64: 2, 3, 2>, scalar_prefetch = 2 : i64, scratch_operands = 1 : i64, tpu.core_type = #tpu.core_type<tc>, window_params = [{transform_indices = @transform_0, window_bounds = array<i64: 1, 8, 8, 32>}, {transform_indices = @transform_1, window_bounds = array<i64: 1, 8, 8, 32>}, {pipeline_mode = #tpu.pipeline_mode<synchronous>, transform_indices = @transform_2, window_bounds = array<i64: 32, 64>}, {pipeline_mode = #tpu.pipeline_mode<synchronous>, transform_indices = @transform_3, window_bounds = array<i64: 1, 1, 64>}, {transform_indices = @transform_4, window_bounds = array<i64: 1, 8, 8, 64>}]} {
    %0 = arith.index_cast %arg1 : i32 to index
    %1 = memref.load %arg3[%0] : memref<3xi32, #tpu.memory_space<smem>>
    %2 = arith.index_cast %arg1 : i32 to index
    %3 = memref.load %arg4[%2] : memref<3xi32, #tpu.memory_space<smem>>
    %4 = arith.cmpi eq, %1, %3 : i32
    %c0_i32 = arith.constant 0 : i32
    %5 = arith.cmpi eq, %arg2, %c0_i32 : i32
    %6 = arith.extui %5 : i1 to i32
    %c0_i32_0 = arith.constant 0 : i32
    %7 = arith.cmpi ne, %6, %c0_i32_0 : i32
    scf.if %7 {
      %c0 = arith.constant 0 : index
      %c0_2 = arith.constant 0 : index
      %c0_3 = arith.constant 0 : index
      %c0_4 = arith.constant 0 : index
      %13 = vector.load %arg5[%c0, %c0_2, %c0_3, %c0_4] : memref<1x8x8x32xf32, #tpu.memory_space<vmem>>, vector<1x8x8x32xf32>
      %14 = vector.shape_cast %13 : vector<1x8x8x32xf32> to vector<8x8x32xf32>
      %cst = arith.constant dense<0.000000e+00> : vector<8x8xf32>
      %15 = vector.multi_reduction <add>, %14, %cst [2] : vector<8x8x32xf32> to vector<8x8xf32>
      %16 = vector.shape_cast %15 : vector<8x8xf32> to vector<8x8x1xf32>
      %cst_5 = arith.constant 3.200000e+01 : f32
      %17 = vector.broadcast %cst_5 : f32 to vector<8x8x1xf32>
      %18 = arith.divf %16, %17 : vector<8x8x1xf32>
      %19 = vector.broadcast %18 : vector<8x8x1xf32> to vector<8x8x32xf32>
      %20 = arith.subf %14, %19 : vector<8x8x32xf32>
      %21 = arith.mulf %20, %20 : vector<8x8x32xf32>
      %cst_6 = arith.constant dense<0.000000e+00> : vector<8x8xf32>
      %22 = vector.multi_reduction <add>, %21, %cst_6 [2] : vector<8x8x32xf32> to vector<8x8xf32>
      %23 = vector.shape_cast %22 : vector<8x8xf32> to vector<8x8x1xf32>
      %cst_7 = arith.constant 3.200000e+01 : f32
      %24 = vector.broadcast %cst_7 : f32 to vector<8x8x1xf32>
      %25 = arith.divf %23, %24 : vector<8x8x1xf32>
      %26 = vector.broadcast %18 : vector<8x8x1xf32> to vector<8x8x32xf32>
      %27 = arith.subf %14, %26 : vector<8x8x32xf32>
      %cst_8 = arith.constant 9.99999974E-6 : f32
      %28 = vector.broadcast %cst_8 : f32 to vector<8x8x1xf32>
      %29 = arith.addf %25, %28 : vector<8x8x1xf32>
      %30 = math.rsqrt %29 : vector<8x8x1xf32>
      %31 = vector.broadcast %30 : vector<8x8x1xf32> to vector<8x8x32xf32>
      %32 = arith.mulf %27, %31 : vector<8x8x32xf32>
      %33 = vector.shape_cast %32 : vector<8x8x32xf32> to vector<64x32xf32>
      %c0_9 = arith.constant 0 : index
      %c0_10 = arith.constant 0 : index
      %34 = vector.load %arg7[%c0_9, %c0_10] : memref<32x64xf32, #tpu.memory_space<vmem>>, vector<32x64xf32>
      %cst_11 = arith.constant dense<0.000000e+00> : vector<64x64xf32>
      %35 = tpu.matmul %33, %34, %cst_11 {dimension_numbers = #tpu.dot_dimension_numbers<[1], [0], [0], [1], [0, 0, 1, 1], [], []>} : vector<64x32xf32>, vector<32x64xf32>, vector<64x64xf32> -> vector<64x64xf32>
      %36 = vector.shape_cast %35 : vector<64x64xf32> to vector<8x8x64xf32>
      %c0_12 = arith.constant 0 : index
      %c0_13 = arith.constant 0 : index
      %c0_14 = arith.constant 0 : index
      %37 = vector.load %arg8[%c0_12, %c0_13, %c0_14] : memref<1x1x64xf32, #tpu.memory_space<vmem>>, vector<1x1x64xf32>
      %38 = vector.broadcast %37 : vector<1x1x64xf32> to vector<8x8x64xf32>
      %39 = arith.addf %36, %38 : vector<8x8x64xf32>
      %40 = arith.extui %4 : i1 to i32
      %c0_i32_15 = arith.constant 0 : i32
      %41 = arith.cmpi ne, %40, %c0_i32_15 : i32
      scf.if %41 {
        %45 = tpu.transpose %39, [1, 0, 2] : vector<8x8x64xf32> -> vector<8x8x64xf32>
        %46 = arith.addf %39, %45 : vector<8x8x64xf32>
        %c0_18 = arith.constant 0 : index
        %c0_19 = arith.constant 0 : index
        %c0_20 = arith.constant 0 : index
        %c0_21 = arith.constant 0 : index
        %47 = vector.load %arg9[%c0_18, %c0_19, %c0_20, %c0_21] : memref<1x8x8x64xf32, #tpu.memory_space<vmem>>, vector<1x8x8x64xf32>
        %48 = vector.shape_cast %47 : vector<1x8x8x64xf32> to vector<8x8x64xf32>
        %49 = vector.shape_cast %46 : vector<8x8x64xf32> to vector<1x8x8x64xf32>
        tpu.vector_store %arg9[%c0_18, %c0_19, %c0_20, %c0_21], %49 {strides = array<i32>} : memref<1x8x8x64xf32, #tpu.memory_space<vmem>>, vector<1x8x8x64xf32>,
      } else {
      }
      %true_16 = arith.constant true
      %42 = arith.xori %4, %true_16 : i1
      %43 = arith.extui %42 : i1 to i32
      %c0_i32_17 = arith.constant 0 : i32
      %44 = arith.cmpi ne, %43, %c0_i32_17 : i32
      scf.if %44 {
        %c0_18 = arith.constant 0 : index
        %c0_19 = arith.constant 0 : index
        %c0_20 = arith.constant 0 : index
        %c0_21 = arith.constant 0 : index
        %45 = vector.load %arg6[%c0_18, %c0_19, %c0_20, %c0_21] : memref<1x8x8x32xf32, #tpu.memory_space<vmem>>, vector<1x8x8x32xf32>
        %46 = vector.shape_cast %45 : vector<1x8x8x32xf32> to vector<8x8x32xf32>
        %47 = tpu.transpose %46, [1, 0, 2] : vector<8x8x32xf32> -> vector<8x8x32xf32>
        %cst_22 = arith.constant dense<0.000000e+00> : vector<8x8xf32>
        %48 = vector.multi_reduction <add>, %47, %cst_22 [2] : vector<8x8x32xf32> to vector<8x8xf32>
        %49 = vector.shape_cast %48 : vector<8x8xf32> to vector<8x8x1xf32>
        %cst_23 = arith.constant 3.200000e+01 : f32
        %50 = vector.broadcast %cst_23 : f32 to vector<8x8x1xf32>
        %51 = arith.divf %49, %50 : vector<8x8x1xf32>
        %52 = vector.broadcast %51 : vector<8x8x1xf32> to vector<8x8x32xf32>
        %53 = arith.subf %47, %52 : vector<8x8x32xf32>
        %54 = arith.mulf %53, %53 : vector<8x8x32xf32>
        %cst_24 = arith.constant dense<0.000000e+00> : vector<8x8xf32>
        %55 = vector.multi_reduction <add>, %54, %cst_24 [2] : vector<8x8x32xf32> to vector<8x8xf32>
        %56 = vector.shape_cast %55 : vector<8x8xf32> to vector<8x8x1xf32>
        %cst_25 = arith.constant 3.200000e+01 : f32
        %57 = vector.broadcast %cst_25 : f32 to vector<8x8x1xf32>
        %58 = arith.divf %56, %57 : vector<8x8x1xf32>
        %59 = vector.broadcast %51 : vector<8x8x1xf32> to vector<8x8x32xf32>
        %60 = arith.subf %47, %59 : vector<8x8x32xf32>
        %cst_26 = arith.constant 9.99999974E-6 : f32
        %61 = vector.broadcast %cst_26 : f32 to vector<8x8x1xf32>
        %62 = arith.addf %58, %61 : vector<8x8x1xf32>
        %63 = math.rsqrt %62 : vector<8x8x1xf32>
        %64 = vector.broadcast %63 : vector<8x8x1xf32> to vector<8x8x32xf32>
        %65 = arith.mulf %60, %64 : vector<8x8x32xf32>
        %66 = vector.shape_cast %65 : vector<8x8x32xf32> to vector<64x32xf32>
        %c0_27 = arith.constant 0 : index
        %c0_28 = arith.constant 0 : index
        %67 = vector.load %arg7[%c0_27, %c0_28] : memref<32x64xf32, #tpu.memory_space<vmem>>, vector<32x64xf32>
        %cst_29 = arith.constant dense<0.000000e+00> : vector<64x64xf32>
        %68 = tpu.matmul %66, %67, %cst_29 {dimension_numbers = #tpu.dot_dimension_numbers<[1], [0], [0], [1], [0, 0, 1, 1], [], []>} : vector<64x32xf32>, vector<32x64xf32>, vector<64x64xf32> -> vector<64x64xf32>
        %69 = vector.shape_cast %68 : vector<64x64xf32> to vector<8x8x64xf32>
        %c0_30 = arith.constant 0 : index
        %c0_31 = arith.constant 0 : index
        %c0_32 = arith.constant 0 : index
        %70 = vector.load %arg8[%c0_30, %c0_31, %c0_32] : memref<1x1x64xf32, #tpu.memory_space<vmem>>, vector<1x1x64xf32>
        %71 = vector.broadcast %70 : vector<1x1x64xf32> to vector<8x8x64xf32>
        %72 = arith.addf %69, %71 : vector<8x8x64xf32>
        %73 = arith.addf %39, %72 : vector<8x8x64xf32>
        %c0_33 = arith.constant 0 : index
        %c0_34 = arith.constant 0 : index
        %c0_35 = arith.constant 0 : index
        %74 = vector.load %arg10[%c0_33, %c0_34, %c0_35] : memref<8x8x64xf32, #tpu.memory_space<vmem>>, vector<8x8x64xf32>
        tpu.vector_store %arg10[%c0_33, %c0_34, %c0_35], %73 {strides = array<i32>} : memref<8x8x64xf32, #tpu.memory_space<vmem>>, vector<8x8x64xf32>,
        %c0_36 = arith.constant 0 : index
        %c0_37 = arith.constant 0 : index
        %c0_38 = arith.constant 0 : index
        %c0_39 = arith.constant 0 : index
        %75 = vector.load %arg9[%c0_36, %c0_37, %c0_38, %c0_39] : memref<1x8x8x64xf32, #tpu.memory_space<vmem>>, vector<1x8x8x64xf32>
        %76 = vector.shape_cast %75 : vector<1x8x8x64xf32> to vector<8x8x64xf32>
        %77 = vector.shape_cast %73 : vector<8x8x64xf32> to vector<1x8x8x64xf32>
        tpu.vector_store %arg9[%c0_36, %c0_37, %c0_38, %c0_39], %77 {strides = array<i32>} : memref<1x8x8x64xf32, #tpu.memory_space<vmem>>, vector<1x8x8x64xf32>,
      } else {
      }
    } else {
    }
    %c1_i32 = arith.constant 1 : i32
    %8 = arith.cmpi eq, %arg2, %c1_i32 : i32
    %true = arith.constant true
    %9 = arith.xori %4, %true : i1
    %10 = arith.andi %8, %9 : i1
    %11 = arith.extui %10 : i1 to i32
    %c0_i32_1 = arith.constant 0 : i32
    %12 = arith.cmpi ne, %11, %c0_i32_1 : i32
    scf.if %12 {
      %c0 = arith.constant 0 : index
      %c0_2 = arith.constant 0 : index
      %c0_3 = arith.constant 0 : index
      %13 = vector.load %arg10[%c0, %c0_2, %c0_3] : memref<8x8x64xf32, #tpu.memory_space<vmem>>, vector<8x8x64xf32>
      %14 = tpu.transpose %13, [1, 0, 2] : vector<8x8x64xf32> -> vector<8x8x64xf32>
      %c0_4 = arith.constant 0 : index
      %c0_5 = arith.constant 0 : index
      %c0_6 = arith.constant 0 : index
      %c0_7 = arith.constant 0 : index
      %15 = vector.load %arg9[%c0_4, %c0_5, %c0_6, %c0_7] : memref<1x8x8x64xf32, #tpu.memory_space<vmem>>, vector<1x8x8x64xf32>
      %16 = vector.shape_cast %15 : vector<1x8x8x64xf32> to vector<8x8x64xf32>
      %17 = vector.shape_cast %14 : vector<8x8x64xf32> to vector<1x8x8x64xf32>
      tpu.vector_store %arg9[%c0_4, %c0_5, %c0_6, %c0_7], %17 {strides = array<i32>} : memref<1x8x8x64xf32, #tpu.memory_space<vmem>>, vector<1x8x8x64xf32>,
    } else {
    }
    return
  }
  func.func @transform_0(%arg0: i32, %arg1: i32, %arg2: i32, %arg3: memref<3xi32, #tpu.memory_space<smem>>, %arg4: memref<3xi32, #tpu.memory_space<smem>>) -> (i32, i32, i32, i32) {
    %0 = arith.index_cast %arg1 : i32 to index
    %1 = memref.load %arg3[%0] : memref<3xi32, #tpu.memory_space<smem>>
    %2 = arith.index_cast %arg1 : i32 to index
    %3 = memref.load %arg4[%2] : memref<3xi32, #tpu.memory_space<smem>>
    %c0_i32 = arith.constant 0 : i32
    %c0_i32_0 = arith.constant 0 : i32
    return %arg0, %1, %3, %c0_i32 : i32, i32, i32, i32
  }
  func.func @transform_1(%arg0: i32, %arg1: i32, %arg2: i32, %arg3: memref<3xi32, #tpu.memory_space<smem>>, %arg4: memref<3xi32, #tpu.memory_space<smem>>) -> (i32, i32, i32, i32) {
    %0 = arith.index_cast %arg1 : i32 to index
    %1 = memref.load %arg4[%0] : memref<3xi32, #tpu.memory_space<smem>>
    %2 = arith.index_cast %arg1 : i32 to index
    %3 = memref.load %arg3[%2] : memref<3xi32, #tpu.memory_space<smem>>
    %c0_i32 = arith.constant 0 : i32
    %c0_i32_0 = arith.constant 0 : i32
    return %arg0, %1, %3, %c0_i32 : i32, i32, i32, i32
  }
  func.func @transform_2(%arg0: i32, %arg1: i32, %arg2: i32, %arg3: memref<3xi32, #tpu.memory_space<smem>>, %arg4: memref<3xi32, #tpu.memory_space<smem>>) -> (i32, i32) {
    %c0_i32 = arith.constant 0 : i32
    %c0_i32_0 = arith.constant 0 : i32
    %c0_i32_1 = arith.constant 0 : i32
    return %c0_i32, %c0_i32_0 : i32, i32
  }
  func.func @transform_3(%arg0: i32, %arg1: i32, %arg2: i32, %arg3: memref<3xi32, #tpu.memory_space<smem>>, %arg4: memref<3xi32, #tpu.memory_space<smem>>) -> (i32, i32, i32) {
    %c0_i32 = arith.constant 0 : i32
    %c0_i32_0 = arith.constant 0 : i32
    %c0_i32_1 = arith.constant 0 : i32
    %c0_i32_2 = arith.constant 0 : i32
    return %c0_i32, %c0_i32_0, %c0_i32_1 : i32, i32, i32
  }
  func.func @transform_4(%arg0: i32, %arg1: i32, %arg2: i32, %arg3: memref<3xi32, #tpu.memory_space<smem>>, %arg4: memref<3xi32, #tpu.memory_space<smem>>) -> (i32, i32, i32, i32) {
    %0 = arith.index_cast %arg1 : i32 to index
    %1 = memref.load %arg3[%0] : memref<3xi32, #tpu.memory_space<smem>>
    %2 = arith.index_cast %arg1 : i32 to index
    %3 = memref.load %arg4[%2] : memref<3xi32, #tpu.memory_space<smem>>
    %4 = arith.subi %3, %1 : i32
    %5 = arith.muli %arg2, %4 : i32
    %6 = arith.addi %1, %5 : i32
    %7 = arith.subi %1, %3 : i32
    %8 = arith.muli %arg2, %7 : i32
    %9 = arith.addi %3, %8 : i32
    %c0_i32 = arith.constant 0 : i32
    %c0_i32_0 = arith.constant 0 : i32
    return %arg0, %6, %9, %c0_i32 : i32, i32, i32, i32
  }
}

</mosaic_0001>

<bundles_post_ra>
// kernel: tpu_custom_call.1
= control target key start
LH: loop header
LB: loop body
LE: loop exit
PB: predicated region body
PF: predicated region fallthrough
CT: control target
= control target key end

     0   :  { %s3029_s0 = inlined_call_operand.hbm [shape: s32[3], index: 0, kind: input, shape index: {}]   ;;  %s3030_s2 = inlined_call_operand.hbm [shape: f32[2,16,16,32], index: 2, kind: input, shape index: {}]   ;;  %s3031_s3 = inlined_call_operand.hbm [shape: f32[2,16,16,32], index: 3, kind: input, shape index: {}]   ;;  %s3032_s4 = inlined_call_operand.hbm [shape: f32[32,64], index: 4, kind: input, shape index: {}]   ;;  %s3033_s5 = inlined_call_operand.vmem [shape: f32[1,1,64], index: 5, kind: input, shape index: {}]   ;;  %s3034_s6 = inlined_call_operand.hbm [shape: f32[2,16,16,64], index: 6, kind: output, shape index: {}]   ;;  %s3035_s1 = inlined_call_operand.vmem [shape: s32[3], index: 1, kind: input, shape index: {}]  }
   0x1   :  { %3085 = sst [smem:[#allocation48_spill]] %s3030_s2  ;;  %s1916_s23 = scalar_lea.hbm %s3029_s0, 16 }
   0x2   :  { %3086 = sst [smem:[#allocation49_spill]] %s3031_s3  ;;  %p1917_p0 = scmp.ne.s32.totalorder %s3029_s0, %s1916_s23 }
   0x3   :  { %3087 = sst [smem:[#allocation50_spill]] %s3032_s4  ;;  %p1920_p1 = scmp.lt.u32.totalorder %s1916_s23, %s3029_s0 }
   0x4   :  { %3088 = sst [smem:[#allocation51_spill]] %s3033_s5 }
   0x5   :  { %3089 = sst [smem:[#allocation52_spill]] %s3034_s6  ;;  %p1922_p2 = pnand %p1920_p1, %p1917_p0 }
   0x7   :  { %1925 = shalt.err (!%p1922_p2)  }
   0x8   :  { %s2200_s28 = smov [#allocation4]   ;;  %s13_s9 = sshll.u32 %s3035_s1, 4  ;;  %s14_s9 = int_to_ptr.vmem [resolvable:$true] %s13_s9 }
   0x9   :  { %12 = dma.hbm_to_smem %s3029_s0, 16, %s2200_s28, [#allocation3] }
   0xa   :  { %s1926_s10 = scalar_lea.vmem %s14_s9, 16  ;;  %p1931_p4 = scmp.lt.s32.totalorder %s14_s9, %s14_s9 }
   0xb   :  { %p1927_p3 = scmp.ne.s32.totalorder %s14_s9, %s1926_s10  ;;  %p1932_p5 = scmp.lt.s32.totalorder %s1926_s10, %s1926_s10 }
   0xd   :  { %p1933_p6 = por %p1932_p5, %p1931_p4 }
   0xf   :  { %p1934_p7 = pnand %p1933_p6, %p1927_p3 }
  0x11   :  { %1937 = shalt.err (!%p1934_p7)  }
  0x12   :  { %s2201_s11 = smov [#allocation5]  }
  0x13   :  { %16 = dma.vmem_to_smem %s14_s9, 16, %s2201_s11, [#allocation3] }
  0x14   :  { %2118 = dma.done.wait [#allocation3], 32 }
  0x15   :  { %2119 = vsyncadd [#allocation3], 4294967264 }
  0x16   :  { %18 = sfence }
  0x17   :  { %19 = vsyncpa [#allocation7], 0 }
  0x18   :  { %21 = vsyncpa [#allocation7 + $0x1], 0 }
  0x19   :  { %22 = vsyncpa [#allocation10], 0 }
  0x1a   :  { %24 = vsyncpa [#allocation10 + $0x1], 0 }
  0x1b   :  { %25 = vsyncpa [#allocation8], 0 }
  0x1c   :  { %27 = vsyncpa [#allocation8 + $0x1], 0  ;;  %s2268_s0 = smov 0   ;;  %s2270_s1 = smov 0  }
  0x1d   :  { %s2272_s12 = smov 0   ;;  %s2274_s13 = smov 0  }
  0x1e   :  { %s2276_s14 = smov 0   ;;  %s2278_s15 = smov 0  }
  0x1f   :  { %s2280_s16 = smov 0   ;;  %s2282_s17 = smov 0  }
  0x20   :  { %s2284_s18 = smov 0   ;;  %s2286_s19 = smov 0  }
  0x21   :  { %s2288_s20 = smov 0   ;;  %s2290_s21 = smov 0  }
  0x22   :  { %s2292_s22 = smov 0   ;;  %s2294_s23 = smov 0  }
  0x23   :  { %s2296_s24 = smov 0   ;;  %s2298_s25 = smov 0  }
  0x24 LB: > { %3090 = sst [smem:[#allocation28_spill]] %s2138_s0  ;;  %s2345_s26 = sadd.s32 4294967295, %s2198_s25   ;;  %s2198_s25 = sphi %s2298_s25, %s33_s25   ;;  %s2194_s24 = sphi %s2296_s24, %s3176_s24   ;;  %s2190_s23 = sphi %s2294_s23, %s3175_s23   ;;  %s2186_s22 = sphi %s2292_s22, %s3174_s22   ;;  %s2182_s21 = sphi %s2290_s21, %s3173_s21   ;;  %s2178_s20 = sphi %s2288_s20, %s3185_s20   ;;  %s2174_s19 = sphi %s2286_s19, %s3184_s19   ;;  %s2170_s18 = sphi %s2284_s18, %s3183_s18   ;;  %s2166_s17 = sphi %s2282_s17, %s3182_s17   ;;  %s2162_s16 = sphi %s2280_s16, %s3181_s16   ;;  %s2158_s15 = sphi %s2278_s15, %s3180_s15   ;;  %s2154_s14 = sphi %s2276_s14, %s3179_s14   ;;  %s2150_s13 = sphi %s2274_s13, %s3170_s13   ;;  %s2146_s12 = sphi %s2272_s12, %s3178_s12   ;;  %s2142_s1 = sphi %s2270_s1, %s3177_s1   ;;  %s2138_s0 = sphi %s2268_s0, %s3169_s0  }
  0x25   : > { %3091 = sst [smem:[#allocation29_spill]] %s2142_s1  ;;  %p3036_p8 = scmp.eq.s32.totalorder %s2198_s25, 0 }
  0x26   : > { %3092 = sst [smem:[#allocation30_spill]] %s2154_s14  ;;  %p80_p9 = scmp.ne.s32.totalorder %s2166_s17, %s2162_s16 }
  0x27   : > { %3093 = sst [smem:[#allocation31_spill]] %s2174_s19  ;;  %p3042_p10 = scmp.eq.s32.totalorder %s2345_s26, 0 }
  0x28   : > { %3094 = sst [smem:[#allocation32_spill]] %s2178_s20  ;;  %p108_p11 = scmp.ne.s32.totalorder %s2158_s15, %s2154_s14 }
  0x29   : > { %3095 = sst [smem:[#allocation33_spill]] %s2182_s21  ;;  %p114_p12 = scmp.ne.s32.totalorder %s2154_s14, %s2150_s13 }
  0x2a   : > { %3096 = sst [smem:[#allocation34_spill]] %s2186_s22  ;;  %s1534_s27 = sadd.s32 4294967294, %s2198_s25  }
  0x2b   : > { %3097 = sst [smem:[#allocation35_spill]] %s2190_s23  ;;  %p2356_p13 = por %p3042_p10, %p80_p9 }
  0x2c   : > { %3098 = sst [smem:[#allocation36_spill]] %s2194_s24  ;;  %p2362_p0 = por %p108_p11, %p3036_p8 }
  0x2d   : > { %3099 = sst [smem:[#allocation37_spill]] %s2345_s26  ;;  %p2368_p1 = por %p114_p12, %p3042_p10 }
  0x2e   : > { %s3100_s28 = scalar_select %p2356_p13, 1, 0 }
  0x2f   : > { %s3102_s29 = scalar_select %p2362_p0, 1, 0 }
  0x30   : > { %3101 = sst [smem:[#allocation38_spill]] %s3100_s28  ;;  %p199_p2 = scmp.ne.s32.totalorder %s2146_s12, %s2142_s1 }
  0x31   : > { %3103 = sst [smem:[#allocation39_spill]] %s3102_s29  ;;  %p200_p3 = scmp.eq.s32.totalorder %s2345_s26, 11 }
  0x32   : > { %s3104_s30 = scalar_select %p2368_p1, 1, 0 }
  0x33   : > { %p205_p4 = scmp.ne.s32.totalorder %s2142_s1, %s2138_s0  ;;  %p206_p5 = scmp.eq.s32.totalorder %s1534_s27, 11 }
  0x34   : > { %3105 = sst [smem:[#allocation40_spill]] %s3104_s30  ;;  %p2377_p6 = por %p200_p3, %p199_p2 }
  0x35   : > { %p1535_p7 = scmp.ge.s32.totalorder %s2198_s25, 1  ;;  %p2382_p9 = por %p206_p5, %p205_p4 }
  0x36   : > { %s3106_s7 = scalar_select %p2377_p6, 1, 0 }
  0x37   : > { %s3108_s8 = scalar_select %p2382_p9, 1, 0 }
  0x38   : > { %3107 = sst [smem:[#allocation41_spill]] %s3106_s7  ;;  %p213_p11 = scmp.lt.s32.totalorder %s2198_s25, 13 }
  0x39   : > { %3109 = sst [smem:[#allocation42_spill]] %s3108_s8  ;;  %s2202_s10 = smov [#allocation11]  }
  0x3a   : > { %p2387_p12 = pnand %p1535_p7, %p213_p11  ;;  %s225_s11 = sshll.u32 %s2202_s10, 4  ;;  %s226_s11 = int_to_ptr.vmem [resolvable:$true] %s225_s11 }
  0x3b   : > { %p3043_p2 = scmp.lt.s32.totalorder %s2198_s25, 12  ;;  %s3115_s4 = sld [smem:[#allocation50_spill]] }
  0x3c   : > { %s3110_s9 = scalar_select %p2387_p12, 1, 0 }
  0x3d   : > { %p1694_p8 = pneg %p2387_p12  ;;  %p2404_p4 = pnand %p3043_p2, %p2362_p0 }
  0x3e   : > { %3111 = sst [smem:[#allocation43_spill]] %s3110_s9 }
  0x3f   : > { %p2396_p3 = pnand %p1694_p8, %p3042_p10 }
  0x40   : > { %s3113_s16 = scalar_select %p2404_p4, 1, 0 }
  0x41   : > { %s1938_s10 = scalar_lea.hbm %s3115_s4, 512  ;;  %p1940_p8 = pneg %p2396_p3 }
  0x42   : > { %3114 = sst [smem:[#allocation44_spill]] %s3113_s16  ;;  %p1939_p5 = scmp.ne.s32.totalorder %s3115_s4, %s1938_s10 }
  0x43   : > { %p1945_p10 = scmp.lt.u32.totalorder %s1938_s10, %s3115_s4 }
  0x44   : > { %p1941_p7 = pnand %p1940_p8, %p1939_p5 }
  0x46   : > { %p1942_p11 = pneg %p1941_p7 }
  0x48   : > { %p1947_p2 = pnand %p1945_p10, %p1942_p11 }
  0x4a   : > { %1950 = shalt.err (!%p1947_p2)
}
  0x4b   : > { %s1951_s5 = scalar_lea.vmem %s226_s11, 512  ;;  %p1959_p13 = scmp.lt.s32.totalorder %s226_s11, %s226_s11 }
  0x4c   : > { %p1952_p9 = scmp.ne.s32.totalorder %s226_s11, %s1951_s5  ;;  %p1960_p12 = scmp.lt.s32.totalorder %s1951_s5, %s1951_s5 }
  0x4e   : > { %p1954_p6 = pnand %p1952_p9, %p1940_p8  ;;  %p1961_p4 = por %p1960_p12, %p1959_p13 }
  0x50   : > { %p1955_p1 = pneg %p1954_p6 }
  0x52   : > { %p1962_p0 = pnand %p1961_p4, %p1955_p1 }
  0x54   : > { %1965 = shalt.err (!%p1962_p0)
}
  0x55   : > { %s3055_s6 = smov 128   ;;  %s3057_s0 = smov 8  }
  0x56   : > { %1697 = dma.hbm_to_vmem [thread:$0]  (!%p2396_p3), %s3115_s4, 512, %s226_s11, [#allocation10], %s3055_s6, %s3055_s6, %s3057_s0  }
  0x57   : > { %s45_s8 = sadd.s32 1, %s2186_s22  ;;  %s48_s27 = sadd.s32 1, %s2190_s23 }
  0x58   : > { %p46_p10 = scmp.ge.s32.totalorder %s45_s8, 2  ;;  %s52_s10 = sadd.s32 1, %s2194_s24 }
  0x59   : > { %s56_s19 = sld [smem:[#allocation4 + %s2190_s23]]  ;;  %s67_s20 = sadd.s32 1, %s2170_s18 }
  0x5a   : > { %s3187_s8 = smov (%p46_p10, %s45_s8), 0  ;;  %s3189_s27 = smov (!%p46_p10, %s48_s27), %s2190_s23 }
  0x5b   : > { %3116 = sst [smem:[#allocation45_spill]] %s3187_s8  ;;  %p50_p13 = scmp.ge.s32.totalorder %s3189_s27, 3 }
  0x5c   : > { %s57_s13 = sld [smem:[#allocation5 + %s2190_s23]]  ;;  %p74_p0 = scmp.ne.s32.totalorder %s2170_s18, %s2166_s17 }
  0x5d   : > { %s90_s1 = sld [smem:[#allocation5 + %s2190_s23]]  ;;  %s3191_s27 = smov (%p50_p13, %s3189_s27), 0 }
  0x5e   : > { %s91_s5 = sld [smem:[#allocation4 + %s2190_s23]]  ;;  %s3193_s10 = smov (!%p50_p13, %s52_s10), %s2194_s24 }
  0x5f   : > { %3117 = sst [smem:[#allocation46_spill]] %s3191_s27  ;;  %p54_p1 = scmp.ge.s32.totalorder %s3193_s10, 2 }
  0x60   : > { %s58_s11 = sld [smem:[#allocation4 + %s3191_s27]]  ;;  %p3120_p12 = scmp.eq.s32.totalorder %s2198_s25, 0 }
  0x61   : > { %s59_s21 = sld [smem:[#allocation5 + %s3191_s27]]  ;;  %s3195_s10 = smov (%p54_p1, %s3193_s10), 0 }
  0x62   : > { %s92_s6 = sld [smem:[#allocation5 + %s3191_s27]]  ;;  %s2461_s14 = ssub.s32 %s2194_s24, %s3195_s10 }
  0x63   : > { %s93_s0 = sld [smem:[#allocation4 + %s3191_s27]]  ;;  %p2499_p2 = por %p3120_p12, %p74_p0 }
  0x64   : > { %s2449_s7 = sld [smem:[#allocation4 + %s2190_s23]]  ;;  %p3124_p4 = scmp.lt.s32.totalorder %s2198_s25, 12 }
  0x65   : > { %3118 = sst [smem:[#allocation47_spill]] %s3195_s10 }
  0x66   : > { %s2454_s4 = sld [smem:[#allocation5 + %s2190_s23]]  ;;  %s61_s28 = ssub.s32 %s56_s19, %s58_s11 }
  0x67   : > { %s2457_s30 = sld [smem:[#allocation4 + %s3191_s27]]  ;;  %s63_s9 = ssub.s32 %s57_s13, %s59_s21 }
  0x68   : > { %s2464_s26 = sld [smem:[#allocation5 + %s3191_s27]]  ;;  %s62_s3 = sor.u32 %s61_s28, %s2461_s14 }
  0x69   : > { %s95_s16 = ssub.s32 %s90_s1, %s92_s6  ;;  %s64_s2 = sor.u32 %s63_s9, %s62_s3 }
  0x6a   : > { %s96_s10 = sor.u32 %s95_s16, %s2461_s14  ;;  %p65_p6 = scmp.eq.s32.totalorder %s64_s2, 0 }
  0x6b   : > { %s97_s27 = ssub.s32 %s91_s5, %s93_s0  ;;  %s3119_s9 = sadd.s32 1, %s2158_s15 }
  0x6c   : > { %s98_s29 = sor.u32 %s97_s27, %s96_s10  ;;  %s168_s24 = ssub.s32 %s2454_s4, %s2449_s7 }
  0x6d   : > { %s2471_s19 = scalar_select %p65_p6, %s2170_s18, %s67_s20  }
  0x6e   : > { %p99_p9 = scmp.eq.s32.totalorder %s98_s29, 0  ;;  %s169_s28 = smul.u32 %s2186_s22, %s168_s24 }
  0x6f   : > { %s171_s1 = ssub.s32 %s2449_s7, %s2454_s4  ;;  %s176_s3 = ssub.s32 %s2464_s26, %s2457_s30 }
  0x70   : > { %s2481_s16 = scalar_select %p99_p9, %s2158_s15, %s3119_s9  }
  0x71   : > { %s170_s2 = sadd.s32 %s169_s28, %s2449_s7  ;;  %s172_s6 = smul.u32 %s2186_s22, %s171_s1 }
  0x72   : > { %s177_s0 = smul.u32 %s176_s3, %s3187_s8  ;;  %s179_s27 = ssub.s32 %s2457_s30, %s2464_s26 }
  0x73   : > { %s173_s20 = sadd.s32 %s172_s6, %s2454_s4  ;;  %s180_s29 = smul.u32 %s179_s27, %s3187_s8 }
  0x74   : > { %s189_s24 = sadd.s32 1, %s2146_s12  ;;  %s178_s10 = sadd.s32 %s177_s0, %s2457_s30 }
  0x75   : > { %s181_s13 = sadd.s32 %s180_s29, %s2464_s26  ;;  %s183_s5 = ssub.s32 %s170_s2, %s178_s10 }
  0x76   : > { %s184_s11 = sor.u32 %s183_s5, %s2461_s14  ;;  %s185_s21 = ssub.s32 %s173_s20, %s181_s13 }
  0x77   : > { %s3121_s7 = sld [smem:[#allocation36_spill]]  ;;  %s3123_s4 = sld [smem:[#allocation39_spill]] }
  0x78   : > { %s186_s1 = sor.u32 %s185_s21, %s184_s11  ;;  %s242_s26 = sand.u32 1, %s2170_s18  }
  0x79   : > { %p187_p3 = scmp.eq.s32.totalorder %s186_s1, 0  ;;  %p3125_p5 = pmov %p3124_p4 }
  0x7a   : > { %s1674_s14 = scalar_select %p2499_p2, [#allocation4], [#allocation13] }
  0x7b   : > { %s2505_s30 = scalar_select %p187_p3, %s2146_s12, %s189_s24  }
  0x7c   : > { %s1675_s3 = scalar_select %p2499_p2, %s2190_s23, 0 }
  0x7d   : > { %s3197_s14 = smov (!%p3124_p4, %s1674_s14), [#allocation19]  ;;  %s1538_s2 = sshll.u32 %s242_s26, 6 }
  0x7e   : > { %s3199_s3 = smov (!%p3125_p5, %s1675_s3), 0  ;;  %p3126_p8 = pmov %p3124_p4 }
  0x7f   : > { %s1676_s9 = scalar_select %p2499_p2, [#allocation5], [#allocation14] }
  0x80   : > { %s247_s6 = sld [smem:[%s3197_s14 + %s3199_s3]]  ;;  %p3127_p7 = pmov %p3124_p4 }
  0x81   : > { %s3201_s9 = smov (!%p3126_p8, %s1676_s9), [#allocation20]  ;;  %s3077_s20 = sshll.u32 %s3121_s7, 5 }
  0x82   : > { %p2524_p11 = pnand %p3127_p7, %p2499_p2  ;;  %s248_s27 = sld [smem:[%s3201_s9 + %s3199_s3]] }
  0x83   : > { %p3129_p10 = scmp.ne.s32.totalorder %s3123_s4, 0  ;;  %s246_s10 = scalar_lea.vmem [#allocation6], %s1538_s2 }
  0x84   : > { %s259_s13 = sshll.u32 %s246_s10, 4  ;;  %p3130_p13 = pmov %p3124_p4  ;;  %s2538_s13 = int_to_ptr.vmem [resolvable:$true] %s259_s13 }
  0x85   : > { %s1679_s29 = scalar_select %p3129_p10, [#allocation5], [#allocation15] }
  0x86   : > { %s1581_s24 = sshll.u32 %s247_s6, 4  ;;  %s3131_s3 = sld [smem:[#allocation48_spill]] }
  0x87   : > { %s1680_s5 = scalar_select %p3129_p10, %s2190_s23, 0 }
  0x88   : > { %s3203_s29 = smov (!%p3130_p13, %s1679_s29), [#allocation21]  ;;  %s254_s11 = sadd.s32 %s1581_s24, %s248_s27 }
  0x89   : > { %s256_s21 = sadd.s32 %s3077_s20, %s254_s11  ;;  %s271_s2 = sand.u32 1, %s2158_s15  }
  0x8a   : > { %s1542_s28 = sshll.u32 %s256_s21, 7  ;;  %s2548_s6 = scalar_lea.sflag [#allocation7], %s242_s26 }
  0x8b   : > { %p1968_p1 = pneg %p2524_p11 }
  0x8c   : > { %s2545_s9 = scalar_lea.hbm %s3131_s3, %s1542_s28  ;;  %s1971_s11 = scalar_lea.hbm %s3131_s3, 8192 }
  0x8d   : > { %s1966_s10 = scalar_lea.hbm %s2545_s9, 1024  ;;  %p1972_p12 = scmp.lt.u32.totalorder %s2545_s9, %s3131_s3 }
  0x8e   : > { %p1967_p0 = scmp.ne.s32.totalorder %s2545_s9, %s1966_s10  ;;  %p1973_p2 = scmp.lt.u32.totalorder %s1971_s11, %s1966_s10 }
  0x8f   : > { %p1975_p4 = scmp.lt.u32.totalorder %s1966_s10, %s2545_s9 }
  0x90   : > { %p1969_p6 = pnand %p1968_p1, %p1967_p0  ;;  %p1974_p3 = por %p1973_p2, %p1972_p12 }
  0x92   : > { %p1970_p9 = pneg %p1969_p6  ;;  %p1976_p5 = por %p1975_p4, %p1974_p3 }
  0x94   : > { %p1977_p8 = pnand %p1976_p5, %p1970_p9 }
  0x96   : > { %1980 = shalt.err (!%p1977_p8)
}
  0x97   : > { %s1981_s26 = scalar_lea.vmem %s2538_s13, 1024  ;;  %s2205_s1 = smov [#allocation6]  }
  0x98   : > { %p1982_p7 = scmp.ne.s32.totalorder %s2538_s13, %s1981_s26  ;;  %s1986_s14 = sshll.u32 %s2205_s1, 4  ;;  %s1987_s14 = int_to_ptr.vmem [resolvable:$false] %s1986_s14 }
  0x99   : > { %s1988_s27 = scalar_lea.vmem %s1987_s14, 2048  ;;  %p1989_p6 = scmp.lt.s32.totalorder %s2538_s13, %s1987_s14 }
  0x9a   : > { %p1984_p13 = pnand %p1982_p7, %p1968_p1  ;;  %p1990_p12 = scmp.lt.s32.totalorder %s1988_s27, %s1981_s26 }
  0x9c   : > { %p1985_p0 = pneg %p1984_p13  ;;  %p1991_p2 = por %p1990_p12, %p1989_p6 }
  0x9e   : > { %p1992_p3 = pnand %p1991_p2, %p1985_p0 }
  0xa0   : > { %1995 = shalt.err (!%p1992_p3)
}
  0xa1   : > { %s3080_s10 = smov 256   ;;  %s3132_s24 = smov 8  }
  0xa2   : > { %s3133_s11 = smov 128   ;;  %p3134_p1 = scmp.lt.s32.totalorder %s2198_s25, 12 }
  0xa3   : > { %1705 = dma.hbm_to_vmem [thread:$0]  (!%p2524_p11), %s2545_s9, 1024, %s2538_s13, %s2548_s6, %s3080_s10, %s3133_s11, %s3132_s24  }
  0xa4   : > { %s3205_s5 = smov (!%p3134_p1, %s1680_s5), 0  ;;  %s3135_s28 = sld [smem:[#allocation44_spill]] }
  0xa5   : > { %s1681_s0 = scalar_select %p3129_p10, [#allocation4], [#allocation16] }
  0xa6   : > { %s274_s21 = sld [smem:[%s3203_s29 + %s3205_s5]]  ;;  %s1543_s26 = sshll.u32 %s271_s2, 6 }
  0xa7   : > { %p3136_p9 = pmov %p3134_p1  ;;  %s269_s27 = sand.u32 1, %s2198_s25  }
  0xa8   : > { %s273_s20 = scalar_lea.vmem [#allocation9], %s1543_s26  ;;  %s3137_s13 = sshll.u32 %s3121_s7, 5 }
  0xa9   : > { %s3207_s0 = smov (!%p3136_p9, %s1681_s0), [#allocation22]  ;;  %s286_s3 = sshll.u32 %s273_s20, 4  ;;  %s2595_s3 = int_to_ptr.vmem [resolvable:$true] %s286_s3 }
  0xaa   : > { %s275_s1 = sld [smem:[%s3207_s0 + %s3205_s5]]  ;;  %s2602_s5 = scalar_lea.sflag [#allocation10], %s269_s27 }
  0xab   : > { %s3138_s29 = sld [smem:[#allocation49_spill]]  ;;  %p3139_p10 = scmp.ne.s32.totalorder %s3135_s28, 0 }
  0xac   : > { %s1582_s14 = sshll.u32 %s274_s21, 4 }
  0xad   : > { %p1998_p4 = pneg %p3139_p10 }
  0xb0   : > { %s281_s8 = sadd.s32 %s1582_s14, %s275_s1 }
  0xb1   : > { %s283_s9 = sadd.s32 %s3137_s13, %s281_s8  ;;  %s2001_s20 = scalar_lea.hbm %s3138_s29, 8192 }
  0xb2   : > { %s1547_s6 = sshll.u32 %s283_s9, 7 }
  0xb3   : > { %s2600_s23 = scalar_lea.hbm %s3138_s29, %s1547_s6 }
  0xb4   : > { %s1996_s2 = scalar_lea.hbm %s2600_s23, 1024  ;;  %p2002_p7 = scmp.lt.u32.totalorder %s2600_s23, %s3138_s29 }
  0xb5   : > { %p1997_p11 = scmp.ne.s32.totalorder %s2600_s23, %s1996_s2  ;;  %p2003_p13 = scmp.lt.u32.totalorder %s2001_s20, %s1996_s2 }
  0xb6   : > { %p2005_p6 = scmp.lt.u32.totalorder %s1996_s2, %s2600_s23 }
  0xb7   : > { %p1999_p5 = pnand %p1998_p4, %p1997_p11  ;;  %p2004_p0 = por %p2003_p13, %p2002_p7 }
  0xb9   : > { %p2000_p8 = pneg %p1999_p5  ;;  %p2006_p12 = por %p2005_p6, %p2004_p0 }
  0xbb   : > { %p2007_p2 = pnand %p2006_p12, %p2000_p8 }
  0xbd   : > { %2010 = shalt.err (!%p2007_p2)
}
  0xbe   : > { %s2011_s21 = scalar_lea.vmem %s2595_s3, 1024  ;;  %s2207_s26 = smov [#allocation9]  }
  0xbf   : > { %p2012_p3 = scmp.ne.s32.totalorder %s2595_s3, %s2011_s21  ;;  %s2016_s1 = sshll.u32 %s2207_s26, 4  ;;  %s2017_s1 = int_to_ptr.vmem [resolvable:$false] %s2016_s1 }
  0xc0   : > { %s2018_s14 = scalar_lea.vmem %s2017_s1, 2048  ;;  %p2019_p11 = scmp.lt.s32.totalorder %s2595_s3, %s2017_s1 }
  0xc1   : > { %p2014_p1 = pnand %p2012_p3, %p1998_p4  ;;  %p2020_p5 = scmp.lt.s32.totalorder %s2018_s14, %s2011_s21 }
  0xc3   : > { %p2015_p9 = pneg %p2014_p1  ;;  %p2021_p7 = por %p2020_p5, %p2019_p11 }
  0xc5   : > { %p2022_p13 = pnand %p2021_p7, %p2015_p9 }
  0xc7   : > { %2025 = shalt.err (!%p2022_p13)
}
  0xc8   : > { %s3140_s27 = smov 256   ;;  %s3141_s13 = sld [smem:[#allocation43_spill]] }
  0xc9   : > { %1712 = dma.hbm_to_vmem [thread:$0]  (!%p3139_p10), %s2600_s23, 1024, %s2595_s3, %s2602_s5, %s3140_s27, %s3133_s11, %s3132_s24  }
  0xce   : > { %p3142_p4 = scmp.ne.s32.totalorder %s3141_s13, 0 }
  0xcf   : > { %s3143_s9 = sld [smem:[#allocation38_spill]] (!%p3142_p4)  ;;  %s300_s6 = sand.u32 (!%p3142_p4), 1, %s2166_s17  }
  0xd0   : > { %298 = sbr.rel (%p3142_p4) target bundleno = 1431 (0x597), region = 36  ;;  %s1549_s4 = sshll.u32 (!%p3142_p4), %s300_s6, 6 }
  0xd1   : > { %s301_s2 = scalar_lea.sflag (!%p3142_p4), [#allocation7], %s300_s6  ;;  %s2636_s8 = scalar_lea.vmem (!%p3142_p4), [#allocation6], %s1549_s4 }
  0xd5   : > { %p3144_p8 = scmp.ne.s32.totalorder (!%p3142_p4), %s3143_s9, 0 }
  0xd7   : > { %2121 = dma.done.wait (%p3144_p8), %s301_s2, 1024  }
  0xd8   : > { %2123 = vsyncadd (%p3144_p8), %s301_s2, 4294966272  ;;  %s3145_s28 = sld [smem:[#allocation37_spill]]  ;;  %s3146_s7 = sld [smem:[#allocation30_spill]] }
  0xd9   : > { %s3147_s20 = sld [smem:[#allocation40_spill]] }
  0xde   : > { %s309_s10 = sand.u32 1, %s3145_s28   ;;  %s311_s23 = sand.u32 1, %s3146_s7  }
  0xdf   : > { %s1550_s3 = sshll.u32 %s311_s23, 6  ;;  %s310_s24 = scalar_lea.sflag [#allocation10], %s309_s10 }
  0xe0   : > { %s2644_s11 = scalar_lea.vmem [#allocation9], %s1550_s3  ;;  %p3148_p10 = scmp.ne.s32.totalorder %s3147_s20, 0 }
  0xe2   : > { %2125 = dma.done.wait (%p3148_p10), %s310_s24, 1024  }
  0xe3   : > { %2127 = vsyncadd (%p3148_p10), %s310_s24, 4294966272  ;;  %p3149_p0 = scmp.eq.s32.totalorder %s3145_s28, 0 }
  0xe5   : > { %2129 = dma.done.wait (%p3149_p0), [#allocation10], 512   ;;  %p3150_p6 = pmov %p3149_p0 }
  0xe6   : > { %s3151_s5 = sld [smem:[#allocation29_spill]]  ;;  %s3152_s0 = sld [smem:[#allocation32_spill]] }
  0xe7   : > { %2131 = vsyncadd (%p3150_p6), [#allocation10], 4294966784  ;;  %s3153_s13 = sld [smem:[#allocation31_spill]] }
  0xec   : > { %s3082_s21 = sand.u32 1, %s3151_s5   ;;  %s2656_s26 = sld [smem:[#allocation4 + %s3152_s0]] }
  0xed   : > { %s2659_s1 = sld [smem:[#allocation5 + %s3152_s0]]  ;;  %s1552_s14 = sshll.u32 %s3082_s21, 6 }
  0xee   : > { %s2663_s27 = scalar_lea.vmem [#allocation12], %s1552_s14  ;;  %p1553_p12 = scmp.ne.s32.totalorder %s3153_s13, 0 }
  0xef   : > { %v369_v0 = vld [vmem:[%s2636_s8] sm:$0xff] (!%p1553_p12)  ;;  %vm377_vm0 = vcmask (!%p1553_p12), 261120   ;;  %v370_v1 = vld [vmem:[%s2636_s8 + $0x8] sm:$0xff] (!%p1553_p12)  ;;  %v371_v8 = vld [vmem:[%s2636_s8 + $0x10] sm:$0xff] (!%p1553_p12)  ;;  %s3154_s4 = sld [smem:[#allocation51_spill]] (!%p1553_p12) }
  0xf0   : > { %368 = sbr.rel (%p1553_p12) target bundleno = 1355 (0x54b), region = 52  ;;  %v373_v2 = vld [vmem:[%s2636_s8 + $0x20] sm:$0xff] (!%p1553_p12)  ;;  %v378_v3 = vsel (!%p1553_p12), %vm377_vm0, %v369_v0, 0.0  ;;  %v381_v4 = vsel (!%p1553_p12), %vm377_vm0, %v370_v1, 0.0  ;;  %v374_v5 = vld [vmem:[%s2636_s8 + $0x28] sm:$0xff] (!%p1553_p12)  ;;  %v375_v9 = vld [vmem:[%s2636_s8 + $0x30] sm:$0xff] (!%p1553_p12) }
  0xf1   : > { %379 = vadd.xlane.f32.xlu0 (!%p1553_p12), %v378_v3  ;;  %382 = vadd.xlane.f32.xlu1 (!%p1553_p12), %v381_v4  ;;  %v390_v6 = vsel (!%p1553_p12), %vm377_vm0, %v373_v2, 0.0  ;;  %v393_v7 = vsel (!%p1553_p12), %vm377_vm0, %v374_v5, 0.0  ;;  %v384_v10 = vsel (!%p1553_p12), %vm377_vm0, %v371_v8, 0.0  ;;  %v396_v11 = vsel (!%p1553_p12), %vm377_vm0, %v375_v9, 0.0  ;;  %v372_v12 = vld [vmem:[%s2636_s8 + $0x18] sm:$0xff] (!%p1553_p12)  ;;  %v483_v56 = vld [vmem:[#allocation11] sm:$0xff] (!%p1553_p12) }
  0xf2   : > { %v376_v13 = vld [vmem:[%s2636_s8 + $0x38] sm:$0xff] (!%p1553_p12)  ;;  %v387_v14 = vsel (!%p1553_p12), %vm377_vm0, %v372_v12, 0.0  ;;  %v484_v57 = vld [vmem:[#allocation11 + $0x8] sm:$0xff] (!%p1553_p12)  ;;  %v485_v59 = vld [vmem:[#allocation11 + $0x10] sm:$0xff] (!%p1553_p12) }
  0xf3   : > { %v399_v15 = vsel (!%p1553_p12), %vm377_vm0, %v376_v13, 0.0  ;;  %v1648_v58 = vpack.c.bf16 (!%p1553_p12), %v484_v57, %v483_v56  ;;  %v486_v60 = vld [vmem:[#allocation11 + $0x18] sm:$0xff] (!%p1553_p12)  ;;  %p1563_p2 = scmp.ne.s32.totalorder (!%p1553_p12), %s2656_s26, %s2659_s1 }
  0xf4   : > { %v1652_v61 = vpack.c.bf16 (!%p1553_p12), %v486_v60, %v485_v59 }
  0xf5   : > { %391 = vadd.xlane.f32.xlu0 (!%p1553_p12), %v390_v6  ;;  %394 = vadd.xlane.f32.xlu1 (!%p1553_p12), %v393_v7 }
  0xf6   : > { %1649 = vmatprep.subr.bf16.mxu0 (!%p1553_p12), %v1648_v58  ;;  %1664 = vmatprep.subr.bf16.mxu1 (!%p1553_p12), %v1648_v58 }
  0xf7   : > { %1651 = vmatpush3.bf16.msra.mxu0 %v1648_v58  ;;  %1666 = vmatpush3.bf16.msra.mxu1 %v1648_v58  ;;  %v2208_v56 = vmov (!%p1563_p2), 1983009808   ;;  %vm778_vm1 = vcmask (!%p1563_p2), 523264  }
  0xf8   : > { %1653 = vmatprep.subr.bf16.mxu0 %v1652_v61  ;;  %1665 = vmatprep.subr.bf16.mxu1 %v1652_v61  ;;  %v637_v57 = vunpack.c.l.s4 (!%p1563_p2), %v2208_v56 }
  0xf9   : > { %385 = vadd.xlane.f32.xlu0 %v384_v10  ;;  %397 = vadd.xlane.f32.xlu1 %v396_v11 }
  0xfb   : > { %1655 = vmatpush3.bf16.msra.mxu0 %v1652_v61  ;;  %1667 = vmatpush3.bf16.msra.mxu1 %v1652_v61  ;;  %v2209_v61 = vmov (!%p1563_p2), 1934713408  }
  0xfd   : > { %388 = vadd.xlane.f32.xlu0 %v387_v14  ;;  %400 = vadd.xlane.f32.xlu1 %v399_v15 }
 0x17e   : > { %v380_v16 = vpop.xlane.xlu0 %379  ;;  %v383_v17 = vpop.xlane.xlu1 %382 }
 0x17f   : > { %v403_v18 = vmul.f32 0.03125, %v380_v16  ;;  %v404_v19 = vmul.f32 0.03125, %v383_v17 }
 0x181   : > { %v2682_v20 = vsub.f32 %v369_v0, %v403_v18  ;;  %v2684_v21 = vsub.f32 %v370_v1, %v404_v19 }
 0x182   : > { %v392_v22 = vpop.xlane.xlu0 %391  ;;  %v395_v23 = vpop.xlane.xlu1 %394 }
 0x183   : > { %v407_v24 = vmul.f32 0.03125, %v392_v22  ;;  %v408_v25 = vmul.f32 0.03125, %v395_v23  ;;  %v419_v26 = vmul.f32 %v2682_v20, %v2682_v20  ;;  %v420_v27 = vmul.f32 %v2684_v21, %v2684_v21 }
 0x185   : > { %v2690_v28 = vsub.f32 %v373_v2, %v407_v24  ;;  %v2692_v29 = vsub.f32 %v374_v5, %v408_v25  ;;  %v427_v30 = vsel %vm377_vm0, %v419_v26, 0.0  ;;  %v430_v33 = vsel %vm377_vm0, %v420_v27, 0.0 }
 0x186   : > { %428 = vadd.xlane.f32.xlu0 %v427_v30  ;;  %v386_v31 = vpop.xlane.xlu0 %385  ;;  %v398_v32 = vpop.xlane.xlu1 %397 }
 0x187   : > { %v405_v34 = vmul.f32 0.03125, %v386_v31  ;;  %v409_v35 = vmul.f32 0.03125, %v398_v32  ;;  %v423_v36 = vmul.f32 %v2690_v28, %v2690_v28  ;;  %v424_v37 = vmul.f32 %v2692_v29, %v2692_v29 }
 0x189   : > { %v2700_v38 = vsub.f32 %v371_v8, %v405_v34  ;;  %v2702_v39 = vsub.f32 %v375_v9, %v409_v35  ;;  %v439_v40 = vsel %vm377_vm0, %v423_v36, 0.0  ;;  %v442_v43 = vsel %vm377_vm0, %v424_v37, 0.0 }
 0x18a   : > { %431 = vadd.xlane.f32.xlu0 %v430_v33  ;;  %440 = vadd.xlane.f32.xlu1 %v439_v40  ;;  %v389_v41 = vpop.xlane.xlu0 %388  ;;  %v401_v42 = vpop.xlane.xlu1 %400 }
 0x18b   : > { %v406_v44 = vmul.f32 0.03125, %v389_v41  ;;  %v410_v45 = vmul.f32 0.03125, %v401_v42  ;;  %v421_v46 = vmul.f32 %v2700_v38, %v2700_v38  ;;  %v425_v47 = vmul.f32 %v2702_v39, %v2702_v39 }
 0x18d   : > { %v2710_v48 = vsub.f32 %v372_v12, %v406_v44  ;;  %v2712_v49 = vsub.f32 %v376_v13, %v410_v45  ;;  %v433_v50 = vsel %vm377_vm0, %v421_v46, 0.0  ;;  %v445_v51 = vsel %vm377_vm0, %v425_v47, 0.0 }
 0x18e   : > { %443 = vadd.xlane.f32.xlu1 %v442_v43  ;;  %434 = vadd.xlane.f32.xlu0 %v433_v50 }
 0x18f   : > { %v422_v52 = vmul.f32 %v2710_v48, %v2710_v48  ;;  %v426_v53 = vmul.f32 %v2712_v49, %v2712_v49 }
 0x191   : > { %v436_v54 = vsel %vm377_vm0, %v422_v52, 0.0  ;;  %v448_v55 = vsel %vm377_vm0, %v426_v53, 0.0 }
 0x192   : > { %446 = vadd.xlane.f32.xlu1 %v445_v51  ;;  %437 = vadd.xlane.f32.xlu0 %v436_v54 }
 0x196   : > { %449 = vadd.xlane.f32.xlu1 %v448_v55  ;;  %v639_v55 = vlaneseq (!%p1563_p2) }
 0x198   : > { %v640_v59 = vshrl.u32 (!%p1563_p2), %v639_v55, 7 }
 0x213   : > { %v429_v62 = vpop.xlane.xlu0 %428 }
 0x214   : > { %v451_v63 = vmul.f32 0.03125, %v429_v62  ;;  %v701_v62 = vunpack.c.l.s4 (!%p1563_p2), %v2209_v61 }
 0x216   : > { %v459_v0 = vadd.f32 1e-05, %v451_v63  ;;  %v638_v63 = vunpack.c.0.s8 (!%p1563_p2), %v637_v57 }
 0x217   : > { %v441_v1 = vpop.xlane.xlu1 %440  ;;  %v432_v2 = vpop.xlane.xlu0 %431 }
 0x218   : > { %1864 = vrsqrt.f32 %v459_v0  ;;  %v455_v3 = vmul.f32 0.03125, %v441_v1  ;;  %v452_v4 = vmul.f32 0.03125, %v432_v2 }
 0x21a   : > { %v463_v5 = vadd.f32 1e-05, %v455_v3  ;;  %v460_v6 = vadd.f32 1e-05, %v452_v4  ;;  %v702_v3 = vunpack.c.0.s8 (!%p1563_p2), %v701_v62 }
 0x21b   : > { %v444_v7 = vpop.xlane.xlu1 %443  ;;  %v435_v8 = vpop.xlane.xlu0 %434 }
 0x21c   : > { %1866 = vrsqrt.f32 %v463_v5  ;;  %v456_v9 = vmul.f32 0.03125, %v444_v7  ;;  %v453_v10 = vmul.f32 0.03125, %v435_v8  ;;  %v641_v7 = vsub.s32 (!%p1563_p2), %v638_v63, %v640_v59 }
 0x21d   : > { %1868 = vrsqrt.f32 %v460_v6  ;;  %v705_v8 = vsub.s32 (!%p1563_p2), %v702_v3, %v640_v59 }
 0x21e   : > { %v464_v11 = vadd.f32 1e-05, %v456_v9  ;;  %v461_v12 = vadd.f32 1e-05, %v453_v10 }
 0x21f   : > { %v447_v13 = vpop.xlane.xlu1 %446  ;;  %v438_v14 = vpop.xlane.xlu0 %437 }
 0x220   : > { %1870 = vrsqrt.f32 %v464_v11  ;;  %v457_v15 = vmul.f32 0.03125, %v447_v13  ;;  %v454_v16 = vmul.f32 0.03125, %v438_v14 }
 0x221   : > { %1872 = vrsqrt.f32 %v461_v12 }
 0x222   : > { %v1865_v17 = vpop.eup %1864  ;;  %v465_v18 = vadd.f32 1e-05, %v457_v15  ;;  %v462_v19 = vadd.f32 1e-05, %v454_v16 }
 0x223   : > { %v450_v22 = vpop.xlane.xlu1 %449  ;;  %v475_v23 = vmul.f32 %v1865_v17, %v2682_v20 }
 0x224   : > { %1874 = vrsqrt.f32 %v465_v18  ;;  %v458_v24 = vmul.f32 0.03125, %v450_v22 }
 0x225   : > { %1876 = vrsqrt.f32 %v462_v19  ;;  %1616 = vmatprep.mubr.msk.f32.mxu0 %vm377_vm0, %v475_v23 }
 0x226   : > { %v1867_v25 = vpop.eup %1866  ;;  %v466_v26 = vadd.f32 1e-05, %v458_v24 }
 0x227   : > { %v1869_v27 = vpop.eup %1868  ;;  %v479_v30 = vmul.f32 %v1867_v25, %v2690_v28 }
 0x228   : > { %1878 = vrsqrt.f32 %v466_v26  ;;  %v476_v31 = vmul.f32 %v1869_v27, %v2684_v21 }
 0x229   : > { %1622 = vmatprep.mubr.msk.f32.mxu1 %vm377_vm0, %v479_v30 }
 0x22a   : > { %v1871_v32 = vpop.eup %1870  ;;  %1617 = vmatmul.mubr.msk.f32.vlgmr.msra.gmra.mrb[0].mxu0 %vm377_vm0, %v476_v31 }
 0x22b   : > { %v1873_v33 = vpop.eup %1872  ;;  %v480_v20 = vmul.f32 %v1871_v32, %v2692_v29  ;;  %v1562_v29 = vld [vmem:[%s3154_s4] ss:$0 sm:$0xff] }
 0x22c   : > { %v477_v34 = vmul.f32 %v1873_v33, %v2700_v38 }
 0x22d   : > { %1623 = vmatmul.mubr.msk.f32.vlgmr.msra.gmra.mrb[0].mxu1 %vm377_vm0, %v480_v20 }
 0x22e   : > { %v1875_v35 = vpop.eup %1874  ;;  %1619 = vmatprep.mubr.msk.f32.mxu0 %vm377_vm0, %v477_v34 }
 0x22f   : > { %v1877_v36 = vpop.eup %1876  ;;  %v481_v28 = vmul.f32 %v1875_v35, %v2702_v39 }
 0x230   : > { %v478_v21 = vmul.f32 %v1877_v36, %v2710_v48 }
 0x231   : > { %1625 = vmatprep.mubr.msk.f32.mxu1 %vm377_vm0, %v481_v28 }
 0x232   : > { %v1879_v37 = vpop.eup %1878  ;;  %1620 = vmatmul.mubr.msk.f32.gmra.mrb[2].mxu0 %vm377_vm0, %v478_v21 }
 0x233   : > { %v482_v40 = vmul.f32 %v1879_v37, %v2712_v49 }
 0x235   : > { %1626 = vmatmul.mubr.msk.f32.gmra.mrb[2].mxu1 %vm377_vm0, %v482_v40 }
 0x2fd   : > { %v1618_v38 = vpop.f32.mrb[0].mxu0 }
 0x2fe   : > { %v2741_v41 = vadd.f32 %v1618_v38, %v1562_v29  ;;  %v577_v42 = vpop.f32.mrb[1].mxu0 }
 0x2ff   : > { %v2743_v39 = vadd.f32 %v1562_v29, %v577_v42 }
 0x300   : > { %v1624_v43 = vpop.f32.mrb[0].mxu1 }
 0x301   : > { %v2745_v44 = vadd.f32 %v1624_v43, %v1562_v29  ;;  %v597_v45 = vpop.f32.mrb[1].mxu1 }
 0x302   : > { %v2747_v46 = vadd.f32 %v1562_v29, %v597_v45 }
 0x304   : > { %633 = sbr.rel (%p1563_p2) target bundleno = 796 (0x31c), region = 56 }
 0x305   : > { %v1621_v47 = vpop.f32.mrb[2].mxu0 }
 0x306   : > { %v2749_v48 = vadd.f32 %v1621_v47, %v1562_v29  ;;  %v587_v49 = vpop.f32.mrb[3].mxu0 }
 0x307   : > { %v2751_v50 = vadd.f32 %v1562_v29, %v587_v49 }
 0x308   : > { %v1627_v51 = vpop.f32.mrb[2].mxu1  ;;  %v650_v60 = vcombine.low (!%p1563_p2), %v2741_v41, %v2749_v48  ;;  %v651_v4 = vcombine.high (!%p1563_p2), %v2741_v41, %v2749_v48 }
 0x309   : > { %v2753_v52 = vadd.f32 %v1627_v51, %v1562_v29  ;;  %v607_v53 = vpop.f32.mrb[3].mxu1  ;;  %v634_v58 = vcombine.low (!%p1563_p2), %v2743_v39, %v2751_v50  ;;  %v635_v2 = vcombine.high (!%p1563_p2), %v2743_v39, %v2751_v50 }
 0x30a   : > { %v2755_v54 = vadd.f32 %v1562_v29, %v607_v53  ;;  %v658_v10 = vrot.slane (!%p1563_p2), %v650_v60, %v641_v7  ;;  %v665_v14 = vrot.slane (!%p1563_p2), %v651_v4, %v641_v7 }
 0x30b   : > { %v682_v1 = vcombine.low %v2745_v44, %v2753_v52  ;;  %v683_v6 = vcombine.high %v2745_v44, %v2753_v52  ;;  %v642_v9 = vrot.slane %v634_v58, %v641_v7  ;;  %v649_v13 = vrot.slane %v635_v2, %v641_v7 }
 0x30c   : > { %v666_v0 = vcombine.low %v2747_v46, %v2755_v54  ;;  %v667_v5 = vcombine.high %v2747_v46, %v2755_v54 }
 0x30d   : > { %v690_v12 = vrot.slane %v682_v1, %v641_v7  ;;  %v697_v16 = vrot.slane %v683_v6, %v641_v7  ;;  %v698_v17 = vcombine.low %v642_v9, %v658_v10  ;;  %v699_v19 = vcombine.high %v642_v9, %v658_v10 }
 0x30e   : > { %v674_v11 = vrot.slane %v666_v0, %v641_v7  ;;  %v681_v15 = vrot.slane %v667_v5, %v641_v7  ;;  %v714_v23 = vcombine.low %v649_v13, %v665_v14  ;;  %v715_v25 = vcombine.high %v649_v13, %v665_v14 }
 0x30f   : > { %v706_v27 = vrot.slane %v698_v17, %v705_v8  ;;  %v713_v31 = vrot.slane %v699_v19, %v705_v8 }
 0x310   : > { %v730_v18 = vcombine.low %v674_v11, %v690_v12  ;;  %v731_v22 = vcombine.high %v674_v11, %v690_v12  ;;  %v746_v24 = vcombine.low %v681_v15, %v697_v16  ;;  %v747_v26 = vcombine.high %v681_v15, %v697_v16 }
 0x311   : > { %v722_v33 = vrot.slane %v714_v23, %v705_v8  ;;  %v729_v34 = vrot.slane %v715_v25, %v705_v8 }
 0x312   : > { %v738_v30 = vrot.slane %v730_v18, %v705_v8  ;;  %v745_v32 = vrot.slane %v731_v22, %v705_v8  ;;  %v754_v20 = vrot.slane %v746_v24, %v705_v8  ;;  %v761_v35 = vrot.slane %v747_v26, %v705_v8 }
 0x314   : > { %v762_v36 = vcombine.low %v706_v27, %v738_v30  ;;  %v763_v28 = vcombine.high %v706_v27, %v738_v30  ;;  %v764_v21 = vcombine.low %v713_v31, %v745_v32  ;;  %v765_v37 = vcombine.high %v713_v31, %v745_v32 }
 0x315   : > { %v766_v40 = vcombine.low %v722_v33, %v754_v20  ;;  %v767_v29 = vcombine.high %v722_v33, %v754_v20  ;;  %v768_v38 = vcombine.low %v729_v34, %v761_v35  ;;  %v769_v42 = vcombine.high %v729_v34, %v761_v35 }
 0x316   : > { %v770_v43 = vadd.f32 %v762_v36, %v2743_v39  ;;  %v771_v45 = vadd.f32 %v763_v28, %v2741_v41  ;;  %v772_v47 = vadd.f32 %v764_v21, %v2751_v50  ;;  %v773_v49 = vadd.f32 %v765_v37, %v2749_v48 }
 0x317   : > { %v774_v51 = vadd.f32 %v766_v40, %v2747_v46  ;;  %v775_v53 = vadd.f32 %v767_v29, %v2745_v44  ;;  %v776_v55 = vadd.f32 %v768_v38, %v2755_v54  ;;  %v777_v56 = vadd.f32 %v769_v42, %v2753_v52 }
 0x318   : > { %779 = vst.msk [vmem:[%s2663_s27] sm:$0xff] %vm778_vm1, %v770_v43  ;;  %780 = vst.msk [vmem:[%s2663_s27 + $0x8] sm:$0xff] %vm778_vm1, %v771_v45 }
 0x319   : > { %781 = vst.msk [vmem:[%s2663_s27 + $0x10] sm:$0xff] %vm778_vm1, %v772_v47  ;;  %782 = vst.msk [vmem:[%s2663_s27 + $0x18] sm:$0xff] %vm778_vm1, %v773_v49 }
 0x31a   : > { %783 = vst.msk [vmem:[%s2663_s27 + $0x20] sm:$0xff] %vm778_vm1, %v774_v51  ;;  %784 = vst.msk [vmem:[%s2663_s27 + $0x28] sm:$0xff] %vm778_vm1, %v775_v53 }
 0x31b   : > { %785 = vst.msk [vmem:[%s2663_s27 + $0x30] sm:$0xff] %vm778_vm1, %v776_v55  ;;  %786 = vst.msk [vmem:[%s2663_s27 + $0x38] sm:$0xff] %vm778_vm1, %v777_v56 }
 0x31c PF: > { %p1564_p3 = scmp.eq.s32.totalorder %s2656_s26, %s2659_s1 }
 0x31d   : > { %v804_v57 = vlaneseq (!%p1564_p3)  ;;  %v2210_v58 = vmov (!%p1564_p3), 1983009808   ;;  %v1880_v60 = vld [vmem:[%s2644_s11] ss:$16 sps:$4 sm:$0xff] (!%p1564_p3)   ;;  %v2211_v62 = vmov (!%p1564_p3), 1934713408  }
 0x31e   : > { %790 = sbr.rel (%p1564_p3) target bundleno = 1355 (0x54b), region = 60  ;;  %v802_v59 = vunpack.c.l.s4 (!%p1564_p3), %v2210_v58  ;;  %v866_v63 = vunpack.c.l.s4 (!%p1564_p3), %v2211_v62  ;;  %v1882_v1 = vld [vmem:[%s2644_s11 + $0x8] ss:$16 sps:$4 sm:$0xff] (!%p1564_p3)   ;;  %v1884_v2 = vld [vmem:[%s2644_s11 + $0x20] ss:$16 sps:$4 sm:$0xff] (!%p1564_p3)   ;;  %s3155_s28 = sld [smem:[#allocation51_spill]] (!%p1564_p3) }
 0x31f   : > { %v805_v61 = vshrl.u32 (!%p1564_p3), %v804_v57, 7  ;;  %v1886_v3 = vld [vmem:[%s2644_s11 + $0x28] ss:$16 sps:$4 sm:$0xff] (!%p1564_p3)   ;;  %v1888_v5 = vld [vmem:[%s2644_s11 + $0x4] ss:$16 sps:$4 sm:$0xff] (!%p1564_p3)   ;;  %vm1195_vm2 = vcmask (!%p1564_p3), 523264  }
 0x320   : > { %v803_v0 = vunpack.c.0.s8 (!%p1564_p3), %v802_v59  ;;  %v867_v4 = vunpack.c.0.s8 (!%p1564_p3), %v866_v63  ;;  %v1889_v6 = vld [vmem:[%s2644_s11 + $0xc] ss:$16 sps:$4 sm:$0xff] (!%p1564_p3)   ;;  %v1890_v7 = vld [vmem:[%s2644_s11 + $0x24] ss:$16 sps:$4 sm:$0xff] (!%p1564_p3)  }
 0x321   : > { %v1891_v9 = vld [vmem:[%s2644_s11 + $0x2c] ss:$16 sps:$4 sm:$0xff] (!%p1564_p3)  }
 0x322   : > { %v806_v8 = vsub.s32 (!%p1564_p3), %v803_v0, %v805_v61  ;;  %v870_v10 = vsub.s32 (!%p1564_p3), %v867_v4, %v805_v61 }
 0x324   : > { %v807_v11 = vrot.slane (!%p1564_p3), %v1880_v60, %v806_v8  ;;  %v823_v12 = vrot.slane (!%p1564_p3), %v1882_v1, %v806_v8  ;;  %v839_v13 = vrot.slane (!%p1564_p3), %v1884_v2, %v806_v8  ;;  %v855_v14 = vrot.slane (!%p1564_p3), %v1886_v3, %v806_v8 }
 0x325   : > { %v814_v15 = vrot.slane %v1888_v5, %v806_v8  ;;  %v830_v16 = vrot.slane %v1889_v6, %v806_v8  ;;  %v846_v17 = vrot.slane %v1890_v7, %v806_v8  ;;  %v862_v18 = vrot.slane %v1891_v9, %v806_v8 }
 0x326   : > { %v863_v19 = vcombine.low %v807_v11, %v823_v12  ;;  %v895_v22 = vcombine.low %v839_v13, %v855_v14  ;;  %v864_v23 = vcombine.high %v807_v11, %v823_v12  ;;  %v896_v24 = vcombine.high %v839_v13, %v855_v14 }
 0x327   : > { %v879_v25 = vcombine.low %v814_v15, %v830_v16  ;;  %v911_v26 = vcombine.low %v846_v17, %v862_v18  ;;  %v880_v27 = vcombine.high %v814_v15, %v830_v16  ;;  %v912_v30 = vcombine.high %v846_v17, %v862_v18 }
 0x328   : > { %v871_v31 = vrot.slane %v863_v19, %v870_v10  ;;  %v903_v32 = vrot.slane %v895_v22, %v870_v10  ;;  %v878_v34 = vrot.slane %v864_v23, %v870_v10  ;;  %v910_v35 = vrot.slane %v896_v24, %v870_v10 }
 0x329   : > { %v887_v33 = vrot.slane %v879_v25, %v870_v10  ;;  %v919_v20 = vrot.slane %v911_v26, %v870_v10  ;;  %v894_v21 = vrot.slane %v880_v27, %v870_v10  ;;  %v926_v37 = vrot.slane %v912_v30, %v870_v10 }
 0x32a   : > { %v927_v36 = vcombine.low %v871_v31, %v903_v32  ;;  %v928_v28 = vcombine.high %v871_v31, %v903_v32  ;;  %v929_v47 = vcombine.low %v878_v34, %v910_v35  ;;  %v930_v55 = vcombine.high %v878_v34, %v910_v35 }
 0x32b   : > { %v931_v40 = vcombine.low %v887_v33, %v919_v20  ;;  %v932_v29 = vcombine.high %v887_v33, %v919_v20  ;;  %v933_v49 = vcombine.low %v894_v21, %v926_v37  ;;  %v934_v56 = vcombine.high %v894_v21, %v926_v37  ;;  %v1039_v21 = vld [vmem:[#allocation11] sm:$0xff]  ;;  %v1040_v37 = vld [vmem:[#allocation11 + $0x8] sm:$0xff] }
 0x32c   : > { %v935_v38 = vsel %vm377_vm0, %v927_v36, 0.0  ;;  %v938_v42 = vsel %vm377_vm0, %v928_v28, 0.0  ;;  %v941_v51 = vsel %vm377_vm0, %v929_v47, 0.0  ;;  %v944_v57 = vsel %vm377_vm0, %v930_v55, 0.0 }
 0x32d   : > { %936 = vadd.xlane.f32.xlu0 %v935_v38  ;;  %939 = vadd.xlane.f32.xlu1 %v938_v42  ;;  %v947_v43 = vsel %vm377_vm0, %v931_v40, 0.0  ;;  %v950_v45 = vsel %vm377_vm0, %v932_v29, 0.0  ;;  %v953_v53 = vsel %vm377_vm0, %v933_v49, 0.0  ;;  %v956_v58 = vsel %vm377_vm0, %v934_v56, 0.0  ;;  %v1042_v38 = vld [vmem:[#allocation11 + $0x18] sm:$0xff] }
 0x331   : > { %948 = vadd.xlane.f32.xlu0 %v947_v43  ;;  %951 = vadd.xlane.f32.xlu1 %v950_v45 }
 0x335   : > { %942 = vadd.xlane.f32.xlu0 %v941_v51  ;;  %954 = vadd.xlane.f32.xlu1 %v953_v53 }
 0x339   : > { %945 = vadd.xlane.f32.xlu0 %v944_v57  ;;  %957 = vadd.xlane.f32.xlu1 %v956_v58 }
 0x3ba   : > { %v937_v59 = vpop.xlane.xlu0 %936  ;;  %v940_v60 = vpop.xlane.xlu1 %939 }
 0x3bb   : > { %v959_v61 = vmul.f32 0.03125, %v937_v59  ;;  %v960_v62 = vmul.f32 0.03125, %v940_v60 }
 0x3bd   : > { %v2817_v63 = vsub.f32 %v927_v36, %v959_v61  ;;  %v2819_v0 = vsub.f32 %v928_v28, %v960_v62 }
 0x3be   : > { %v949_v1 = vpop.xlane.xlu0 %948  ;;  %v952_v2 = vpop.xlane.xlu1 %951 }
 0x3bf   : > { %v963_v3 = vmul.f32 0.03125, %v949_v1  ;;  %v964_v4 = vmul.f32 0.03125, %v952_v2  ;;  %v975_v5 = vmul.f32 %v2817_v63, %v2817_v63  ;;  %v976_v6 = vmul.f32 %v2819_v0, %v2819_v0 }
 0x3c1   : > { %v2825_v7 = vsub.f32 %v931_v40, %v963_v3  ;;  %v2827_v8 = vsub.f32 %v932_v29, %v964_v4  ;;  %v983_v9 = vsel %vm377_vm0, %v975_v5, 0.0  ;;  %v986_v12 = vsel %vm377_vm0, %v976_v6, 0.0  ;;  %v1041_v29 = vld [vmem:[#allocation11 + $0x10] sm:$0xff] }
 0x3c2   : > { %984 = vadd.xlane.f32.xlu0 %v983_v9  ;;  %v943_v10 = vpop.xlane.xlu0 %942  ;;  %v955_v11 = vpop.xlane.xlu1 %954  ;;  %v1656_v40 = vpack.c.bf16 %v1040_v37, %v1039_v21  ;;  %v1660_v42 = vpack.c.bf16 %v1042_v38, %v1041_v29 }
 0x3c3   : > { %v961_v13 = vmul.f32 0.03125, %v943_v10  ;;  %v965_v14 = vmul.f32 0.03125, %v955_v11  ;;  %v979_v15 = vmul.f32 %v2825_v7, %v2825_v7  ;;  %v980_v16 = vmul.f32 %v2827_v8, %v2827_v8 }
 0x3c4   : > { %1657 = vmatprep.subr.bf16.mxu0 %v1656_v40  ;;  %1668 = vmatprep.subr.bf16.mxu1 %v1656_v40 }
 0x3c5   : > { %v2835_v17 = vsub.f32 %v929_v47, %v961_v13  ;;  %v2837_v18 = vsub.f32 %v933_v49, %v965_v14  ;;  %v995_v19 = vsel %vm377_vm0, %v979_v15, 0.0  ;;  %v998_v24 = vsel %vm377_vm0, %v980_v16, 0.0  ;;  %1659 = vmatpush3.bf16.msra.mxu0 %v1656_v40  ;;  %1670 = vmatpush3.bf16.msra.mxu1 %v1656_v40 }
 0x3c6   : > { %987 = vadd.xlane.f32.xlu0 %v986_v12  ;;  %996 = vadd.xlane.f32.xlu1 %v995_v19  ;;  %v946_v22 = vpop.xlane.xlu0 %945  ;;  %v958_v23 = vpop.xlane.xlu1 %957 }
 0x3c7   : > { %v962_v25 = vmul.f32 0.03125, %v946_v22  ;;  %v966_v26 = vmul.f32 0.03125, %v958_v23  ;;  %v977_v27 = vmul.f32 %v2835_v17, %v2835_v17  ;;  %v981_v30 = vmul.f32 %v2837_v18, %v2837_v18  ;;  %1661 = vmatprep.subr.bf16.mxu0 %v1660_v42  ;;  %1669 = vmatprep.subr.bf16.mxu1 %v1660_v42 }
 0x3c9   : > { %v2845_v31 = vsub.f32 %v930_v55, %v962_v25  ;;  %v2847_v32 = vsub.f32 %v934_v56, %v966_v26  ;;  %v989_v33 = vsel %vm377_vm0, %v977_v27, 0.0  ;;  %v1001_v20 = vsel %vm377_vm0, %v981_v30, 0.0  ;;  %1663 = vmatpush3.bf16.msra.mxu0 %v1660_v42  ;;  %1671 = vmatpush3.bf16.msra.mxu1 %v1660_v42 }
 0x3ca   : > { %999 = vadd.xlane.f32.xlu1 %v998_v24  ;;  %990 = vadd.xlane.f32.xlu0 %v989_v33 }
 0x3cb   : > { %v978_v34 = vmul.f32 %v2845_v31, %v2845_v31  ;;  %v982_v35 = vmul.f32 %v2847_v32, %v2847_v32 }
 0x3cd   : > { %v992_v36 = vsel %vm377_vm0, %v978_v34, 0.0  ;;  %v1004_v28 = vsel %vm377_vm0, %v982_v35, 0.0 }
 0x3ce   : > { %1002 = vadd.xlane.f32.xlu1 %v1001_v20  ;;  %993 = vadd.xlane.f32.xlu0 %v992_v36 }
 0x3d2   : > { %1005 = vadd.xlane.f32.xlu1 %v1004_v28 }
 0x44f   : > { %v985_v43 = vpop.xlane.xlu0 %984 }
 0x450   : > { %v1007_v45 = vmul.f32 0.03125, %v985_v43 }
 0x452   : > { %v1015_v47 = vadd.f32 1e-05, %v1007_v45 }
 0x453   : > { %v997_v49 = vpop.xlane.xlu1 %996  ;;  %v988_v51 = vpop.xlane.xlu0 %987 }
 0x454   : > { %1892 = vrsqrt.f32 %v1015_v47  ;;  %v1011_v53 = vmul.f32 0.03125, %v997_v49  ;;  %v1008_v55 = vmul.f32 0.03125, %v988_v51 }
 0x456   : > { %v1019_v56 = vadd.f32 1e-05, %v1011_v53  ;;  %v1016_v57 = vadd.f32 1e-05, %v1008_v55 }
 0x457   : > { %v1000_v58 = vpop.xlane.xlu1 %999  ;;  %v991_v59 = vpop.xlane.xlu0 %990 }
 0x458   : > { %1894 = vrsqrt.f32 %v1019_v56  ;;  %v1012_v60 = vmul.f32 0.03125, %v1000_v58  ;;  %v1009_v61 = vmul.f32 0.03125, %v991_v59 }
 0x459   : > { %1896 = vrsqrt.f32 %v1016_v57 }
 0x45a   : > { %v1020_v62 = vadd.f32 1e-05, %v1012_v60  ;;  %v1017_v1 = vadd.f32 1e-05, %v1009_v61 }
 0x45b   : > { %v1003_v2 = vpop.xlane.xlu1 %1002  ;;  %v994_v3 = vpop.xlane.xlu0 %993 }
 0x45c   : > { %1898 = vrsqrt.f32 %v1020_v62  ;;  %v1013_v4 = vmul.f32 0.03125, %v1003_v2  ;;  %v1010_v5 = vmul.f32 0.03125, %v994_v3 }
 0x45d   : > { %1900 = vrsqrt.f32 %v1017_v1 }
 0x45e   : > { %v1893_v6 = vpop.eup %1892  ;;  %v1021_v9 = vadd.f32 1e-05, %v1013_v4  ;;  %v1018_v10 = vadd.f32 1e-05, %v1010_v5 }
 0x45f   : > { %v1006_v11 = vpop.xlane.xlu1 %1005  ;;  %v1031_v12 = vmul.f32 %v1893_v6, %v2817_v63 }
 0x460   : > { %1902 = vrsqrt.f32 %v1021_v9  ;;  %v1014_v13 = vmul.f32 0.03125, %v1006_v11 }
 0x461   : > { %1904 = vrsqrt.f32 %v1018_v10  ;;  %1636 = vmatprep.mubr.msk.f32.mxu0 %vm377_vm0, %v1031_v12 }
 0x462   : > { %v1895_v14 = vpop.eup %1894  ;;  %v1022_v15 = vadd.f32 1e-05, %v1014_v13 }
 0x463   : > { %v1897_v16 = vpop.eup %1896  ;;  %v1035_v19 = vmul.f32 %v1895_v14, %v2825_v7 }
 0x464   : > { %1906 = vrsqrt.f32 %v1022_v15  ;;  %v1032_v22 = vmul.f32 %v1897_v16, %v2819_v0 }
 0x465   : > { %1642 = vmatprep.mubr.msk.f32.mxu1 %vm377_vm0, %v1035_v19 }
 0x466   : > { %v1899_v23 = vpop.eup %1898  ;;  %1637 = vmatmul.mubr.msk.f32.vlgmr.msra.gmra.mrb[0].mxu0 %vm377_vm0, %v1032_v22 }
 0x467   : > { %v1901_v24 = vpop.eup %1900  ;;  %v1036_v63 = vmul.f32 %v1899_v23, %v2827_v8 }
 0x468   : > { %v1033_v25 = vmul.f32 %v1901_v24, %v2835_v17  ;;  %v1573_v17 = vld [vmem:[%s3155_s28] ss:$0 sm:$0xff] }
 0x469   : > { %1643 = vmatmul.mubr.msk.f32.vlgmr.msra.gmra.mrb[0].mxu1 %vm377_vm0, %v1036_v63 }
 0x46a   : > { %v1903_v26 = vpop.eup %1902  ;;  %1639 = vmatprep.mubr.msk.f32.mxu0 %vm377_vm0, %v1033_v25 }
 0x46b   : > { %v1905_v27 = vpop.eup %1904  ;;  %v1037_v7 = vmul.f32 %v1903_v26, %v2837_v18 }
 0x46c   : > { %v1034_v0 = vmul.f32 %v1905_v27, %v2845_v31 }
 0x46d   : > { %1645 = vmatprep.mubr.msk.f32.mxu1 %vm377_vm0, %v1037_v7 }
 0x46e   : > { %v1907_v30 = vpop.eup %1906  ;;  %1640 = vmatmul.mubr.msk.f32.gmra.mrb[2].mxu0 %vm377_vm0, %v1034_v0 }
 0x46f   : > { %v1038_v8 = vmul.f32 %v1907_v30, %v2847_v32 }
 0x471   : > { %1646 = vmatmul.mubr.msk.f32.gmra.mrb[2].mxu1 %vm377_vm0, %v1038_v8 }
 0x539   : > { %v1638_v33 = vpop.f32.mrb[0].mxu0 }
 0x53a   : > { %v1180_v20 = vadd.f32 %v1638_v33, %v1573_v17  ;;  %v1133_v18 = vpop.f32.mrb[1].mxu0 }
 0x53b   : > { %v1179_v31 = vadd.f32 %v1573_v17, %v1133_v18 }
 0x53c   : > { %v1188_v34 = vadd.f32 %v1180_v20, %v2741_v41  ;;  %v1644_v35 = vpop.f32.mrb[0].mxu1 }
 0x53d   : > { %v1187_v36 = vadd.f32 %v1179_v31, %v2743_v39  ;;  %v1184_v32 = vadd.f32 %v1644_v35, %v1573_v17  ;;  %v1153_v28 = vpop.f32.mrb[1].mxu1 }
 0x53e   : > { %1197 = vst.msk [vmem:[#allocation2 + $0x8] sm:$0xff] %vm1195_vm2, %v1188_v34  ;;  %1205 = vst.msk [vmem:[%s2663_s27 + $0x8] sm:$0xff] %vm1195_vm2, %v1188_v34  ;;  %v1183_v21 = vadd.f32 %v1573_v17, %v1153_v28 }
 0x53f   : > { %1196 = vst.msk [vmem:[#allocation2] sm:$0xff] %vm1195_vm2, %v1187_v36  ;;  %1204 = vst.msk [vmem:[%s2663_s27] sm:$0xff] %vm1195_vm2, %v1187_v36  ;;  %v1192_v37 = vadd.f32 %v1184_v32, %v2745_v44 }
 0x540   : > { %v1191_v41 = vadd.f32 %v1183_v21, %v2747_v46 }
 0x541   : > { %1201 = vst.msk [vmem:[#allocation2 + $0x28] sm:$0xff] %vm1195_vm2, %v1192_v37  ;;  %1209 = vst.msk [vmem:[%s2663_s27 + $0x28] sm:$0xff] %vm1195_vm2, %v1192_v37  ;;  %v1641_v39 = vpop.f32.mrb[2].mxu0 }
 0x542   : > { %1200 = vst.msk [vmem:[#allocation2 + $0x20] sm:$0xff] %vm1195_vm2, %v1191_v41  ;;  %1208 = vst.msk [vmem:[%s2663_s27 + $0x20] sm:$0xff] %vm1195_vm2, %v1191_v41  ;;  %v1182_v40 = vadd.f32 %v1641_v39, %v1573_v17  ;;  %v1143_v29 = vpop.f32.mrb[3].mxu0 }
 0x543   : > { %v1181_v38 = vadd.f32 %v1573_v17, %v1143_v29 }
 0x544   : > { %v1190_v44 = vadd.f32 %v1182_v40, %v2749_v48  ;;  %v1647_v42 = vpop.f32.mrb[2].mxu1 }
 0x545   : > { %v1189_v46 = vadd.f32 %v1181_v38, %v2751_v50  ;;  %v1186_v43 = vadd.f32 %v1647_v42, %v1573_v17  ;;  %v1163_v45 = vpop.f32.mrb[3].mxu1 }
 0x546   : > { %1199 = vst.msk [vmem:[#allocation2 + $0x18] sm:$0xff] %vm1195_vm2, %v1190_v44  ;;  %1207 = vst.msk [vmem:[%s2663_s27 + $0x18] sm:$0xff] %vm1195_vm2, %v1190_v44  ;;  %v1185_v47 = vadd.f32 %v1573_v17, %v1163_v45 }
 0x547   : > { %1198 = vst.msk [vmem:[#allocation2 + $0x10] sm:$0xff] %vm1195_vm2, %v1189_v46  ;;  %1206 = vst.msk [vmem:[%s2663_s27 + $0x10] sm:$0xff] %vm1195_vm2, %v1189_v46  ;;  %v1194_v49 = vadd.f32 %v1186_v43, %v2753_v52 }
 0x548   : > { %v1193_v51 = vadd.f32 %v1185_v47, %v2755_v54 }
 0x549   : > { %1203 = vst.msk [vmem:[#allocation2 + $0x38] sm:$0xff] %vm1195_vm2, %v1194_v49  ;;  %1211 = vst.msk [vmem:[%s2663_s27 + $0x38] sm:$0xff] %vm1195_vm2, %v1194_v49 }
 0x54a   : > { %1202 = vst.msk [vmem:[#allocation2 + $0x30] sm:$0xff] %vm1195_vm2, %v1193_v51  ;;  %1210 = vst.msk [vmem:[%s2663_s27 + $0x30] sm:$0xff] %vm1195_vm2, %v1193_v51 }
 0x54b PF: > { %s3156_s7 = sld [smem:[#allocation31_spill]]  ;;  %p1213_p9 = scmp.ne.s32.totalorder %s2656_s26, %s2659_s1 }
 0x551   : > { %p1212_p1 = scmp.eq.s32.totalorder %s3156_s7, 1 }
 0x553   : > { %p1214_p11 = pnand %p1213_p9, %p1212_p1 }
 0x554   : > { %v1218_v48 = vld [vmem:[#allocation2] sm:$0xff] (!%p1214_p11)  ;;  %v1219_v50 = vld [vmem:[#allocation2 + $0x8] sm:$0xff] (!%p1214_p11)  ;;  %v1220_v52 = vld [vmem:[#allocation2 + $0x10] sm:$0xff] (!%p1214_p11)  ;;  %v1231_v54 = vlaneseq (!%p1214_p11)  ;;  %v2212_v57 = vmov (!%p1214_p11), 1983009808   ;;  %vm1362_vm3 = vcmask (!%p1214_p11), 523264  }
 0x555   : > { %1217 = sbr.rel (%p1214_p11) target bundleno = 1383 (0x567), region = 64  ;;  %v1221_v53 = vld [vmem:[#allocation2 + $0x18] sm:$0xff] (!%p1214_p11)  ;;  %v1222_v55 = vld [vmem:[#allocation2 + $0x20] sm:$0xff] (!%p1214_p11)  ;;  %v1223_v56 = vld [vmem:[#allocation2 + $0x28] sm:$0xff] (!%p1214_p11)  ;;  %v1229_v58 = vunpack.c.l.s4 (!%p1214_p11), %v2212_v57  ;;  %v2213_v1 = vmov (!%p1214_p11), 1934713408   ;;  %v1227_v9 = vcombine.high (!%p1214_p11), %v1218_v48, %v1220_v52 }
 0x556   : > { %v1224_v59 = vld [vmem:[#allocation2 + $0x30] sm:$0xff] (!%p1214_p11)  ;;  %v1225_v60 = vld [vmem:[#allocation2 + $0x38] sm:$0xff] (!%p1214_p11)  ;;  %v1232_v62 = vshrl.u32 (!%p1214_p11), %v1231_v54, 7  ;;  %v1293_v2 = vunpack.c.l.s4 (!%p1214_p11), %v2213_v1  ;;  %v1243_v11 = vcombine.high (!%p1214_p11), %v1219_v50, %v1221_v53 }
 0x557   : > { %v1908_v61 = vld [vmem:[#allocation2] ss:$16 sps:$4 sm:$0xff] (!%p1214_p11)   ;;  %v1230_v3 = vunpack.c.0.s8 (!%p1214_p11), %v1229_v58  ;;  %v1910_v4 = vld [vmem:[#allocation2 + $0x8] ss:$16 sps:$4 sm:$0xff] (!%p1214_p11)   ;;  %v1259_v12 = vcombine.high (!%p1214_p11), %v1222_v55, %v1224_v59  ;;  %v1275_v13 = vcombine.high (!%p1214_p11), %v1223_v56, %v1225_v60 }
 0x558   : > { %v1912_v5 = vld [vmem:[#allocation2 + $0x20] ss:$16 sps:$4 sm:$0xff] (!%p1214_p11)   ;;  %v1914_v6 = vld [vmem:[#allocation2 + $0x28] ss:$16 sps:$4 sm:$0xff] (!%p1214_p11)   ;;  %v1294_v10 = vunpack.c.0.s8 (!%p1214_p11), %v1293_v2 }
 0x559   : > { %v1233_v14 = vsub.s32 (!%p1214_p11), %v1230_v3, %v1232_v62 }
 0x55a   : > { %v1297_v15 = vsub.s32 (!%p1214_p11), %v1294_v10, %v1232_v62 }
 0x55b   : > { %v1234_v16 = vrot.slane (!%p1214_p11), %v1908_v61, %v1233_v14  ;;  %v1250_v19 = vrot.slane (!%p1214_p11), %v1910_v4, %v1233_v14  ;;  %v1266_v22 = vrot.slane (!%p1214_p11), %v1912_v5, %v1233_v14  ;;  %v1282_v23 = vrot.slane (!%p1214_p11), %v1914_v6, %v1233_v14 }
 0x55c   : > { %v1241_v24 = vrot.slane %v1227_v9, %v1233_v14  ;;  %v1257_v63 = vrot.slane %v1243_v11, %v1233_v14  ;;  %v1273_v25 = vrot.slane %v1259_v12, %v1233_v14  ;;  %v1289_v26 = vrot.slane %v1275_v13, %v1233_v14 }
 0x55d   : > { %v1290_v27 = vcombine.low %v1234_v16, %v1250_v19  ;;  %v1322_v7 = vcombine.low %v1266_v22, %v1282_v23  ;;  %v1291_v0 = vcombine.high %v1234_v16, %v1250_v19  ;;  %v1323_v30 = vcombine.high %v1266_v22, %v1282_v23 }
 0x55e   : > { %v1306_v8 = vcombine.low %v1241_v24, %v1257_v63  ;;  %v1338_v17 = vcombine.low %v1273_v25, %v1289_v26  ;;  %v1307_v33 = vcombine.high %v1241_v24, %v1257_v63  ;;  %v1339_v20 = vcombine.high %v1273_v25, %v1289_v26 }
 0x55f   : > { %v1298_v18 = vrot.slane %v1290_v27, %v1297_v15  ;;  %v1330_v31 = vrot.slane %v1322_v7, %v1297_v15  ;;  %v1305_v34 = vrot.slane %v1291_v0, %v1297_v15  ;;  %v1337_v35 = vrot.slane %v1323_v30, %v1297_v15 }
 0x560   : > { %v1314_v36 = vrot.slane %v1306_v8, %v1297_v15  ;;  %v1346_v32 = vrot.slane %v1338_v17, %v1297_v15  ;;  %v1321_v28 = vrot.slane %v1307_v33, %v1297_v15  ;;  %v1353_v21 = vrot.slane %v1339_v20, %v1297_v15 }
 0x561   : > { %v1354_v37 = vcombine.low %v1298_v18, %v1330_v31  ;;  %v1355_v41 = vcombine.high %v1298_v18, %v1330_v31  ;;  %v1356_v39 = vcombine.low %v1305_v34, %v1337_v35  ;;  %v1357_v40 = vcombine.high %v1305_v34, %v1337_v35 }
 0x562   : > { %v1358_v29 = vcombine.low %v1314_v36, %v1346_v32  ;;  %v1359_v38 = vcombine.high %v1314_v36, %v1346_v32  ;;  %v1360_v44 = vcombine.low %v1321_v28, %v1353_v21  ;;  %v1361_v42 = vcombine.high %v1321_v28, %v1353_v21 }
 0x563   : > { %1363 = vst.msk [vmem:[%s2663_s27] sm:$0xff] %vm1362_vm3, %v1354_v37  ;;  %1364 = vst.msk [vmem:[%s2663_s27 + $0x8] sm:$0xff] %vm1362_vm3, %v1355_v41 }
 0x564   : > { %1365 = vst.msk [vmem:[%s2663_s27 + $0x10] sm:$0xff] %vm1362_vm3, %v1356_v39  ;;  %1366 = vst.msk [vmem:[%s2663_s27 + $0x18] sm:$0xff] %vm1362_vm3, %v1357_v40 }
 0x565   : > { %1367 = vst.msk [vmem:[%s2663_s27 + $0x20] sm:$0xff] %vm1362_vm3, %v1358_v29  ;;  %1368 = vst.msk [vmem:[%s2663_s27 + $0x28] sm:$0xff] %vm1362_vm3, %v1359_v38 }
 0x566   : > { %1369 = vst.msk [vmem:[%s2663_s27 + $0x30] sm:$0xff] %vm1362_vm3, %v1360_v44  ;;  %1370 = vst.msk [vmem:[%s2663_s27 + $0x38] sm:$0xff] %vm1362_vm3, %v1361_v42 }
 0x567 PF: > { %s3157_s20 = sld [smem:[#allocation41_spill]]  ;;  %s3159_s10 = sld [smem:[#allocation32_spill]] }
 0x568   : > { %s3160_s23 = sld [smem:[#allocation31_spill]]  ;;  %s3161_s3 = sld [smem:[#allocation33_spill]] }
 0x569   : > { %s3162_s0 = sld [smem:[#allocation29_spill]]  ;;  %s1397_s1 = sshll.u32 %s2663_s27, 4  ;;  %s2938_s1 = int_to_ptr.vmem [resolvable:$true] %s1397_s1 }
 0x56a   : > { %s3163_s27 = sld [smem:[#allocation52_spill]] }
 0x56d   : > { %p3158_p5 = scmp.ne.s32.totalorder %s3157_s20, 0 }
 0x56e   : > { %s1577_s6 = sshll.u32 %s3161_s3, 5  ;;  %s2214_s3 = smov [#allocation12]  }
 0x56f   : > { %s1688_s24 = scalar_select %p3158_p5, [#allocation4], [#allocation17] }
 0x570   : > { %s3209_s10 = smov (!%p3158_p5, %s3159_s10), 0  ;;  %s3164_s22 = sand.u32 1, %s3162_s0  }
 0x571   : > { %s1690_s11 = scalar_select %p3158_p5, [#allocation5], [#allocation18] }
 0x572   : > { %s1379_s5 = sld [smem:[%s1688_s24 + %s3209_s10]] }
 0x573   : > { %s1380_s26 = sld [smem:[%s1690_s11 + %s3209_s10]] }
 0x579   : > { %s1381_s14 = ssub.s32 %s1380_s26, %s1379_s5  ;;  %s1384_s13 = ssub.s32 %s1379_s5, %s1380_s26 }
 0x57a   : > { %s1382_s9 = smul.u32 %s3160_s23, %s1381_s14  ;;  %s2947_s14 = scalar_lea.sflag [#allocation8], %s3164_s22 }
 0x57b   : > { %s1385_s4 = smul.u32 %s3160_s23, %s1384_s13  ;;  %s2026_s23 = scalar_lea.vmem %s2938_s1, 1024 }
 0x57c   : > { %s1383_s2 = sadd.s32 %s1382_s9, %s1379_s5  ;;  %p2027_p7 = scmp.ne.s32.totalorder %s2938_s1, %s2026_s23 }
 0x57d   : > { %s1386_s8 = sadd.s32 %s1385_s4, %s1380_s26  ;;  %s1583_s28 = sshll.u32 %s1383_s2, 4 }
 0x57e   : > { %s1392_s7 = sadd.s32 %s1583_s28, %s1386_s8  ;;  %p2028_p13 = pnand %p2027_p7, %p3158_p5 }
 0x57f   : > { %s1394_s21 = sadd.s32 %s1577_s6, %s1392_s7  ;;  %s2030_s5 = sshll.u32 %s2214_s3, 4  ;;  %s2031_s5 = int_to_ptr.vmem [resolvable:$false] %s2030_s5 }
 0x580   : > { %s1578_s24 = sshll.u32 %s1394_s21, 7  ;;  %p2029_p4 = pneg %p2028_p13 }
 0x581   : > { %s2943_s11 = scalar_lea.hbm %s3163_s27, %s1578_s24  ;;  %s2032_s26 = scalar_lea.vmem %s2031_s5, 2048 }
 0x582   : > { %p2033_p8 = scmp.lt.s32.totalorder %s2938_s1, %s2031_s5  ;;  %p2034_p10 = scmp.lt.s32.totalorder %s2032_s26, %s2026_s23 }
 0x584   : > { %p2035_p0 = por %p2034_p10, %p2033_p8 }
 0x586   : > { %p2036_p6 = pnand %p2035_p0, %p2029_p4 }
 0x588   : > { %2039 = shalt.err (!%p2036_p6)
}
 0x589   : > { %s2040_s22 = scalar_lea.hbm %s2943_s11, 1024  ;;  %s2044_s0 = scalar_lea.hbm %s3163_s27, 8192 }
 0x58a   : > { %p2041_p12 = scmp.ne.s32.totalorder %s2943_s11, %s2040_s22  ;;  %p2045_p1 = scmp.lt.u32.totalorder %s2943_s11, %s3163_s27 }
 0x58b   : > { %p2046_p9 = scmp.lt.u32.totalorder %s2044_s0, %s2040_s22  ;;  %p2048_p7 = scmp.lt.u32.totalorder %s2040_s22, %s2943_s11 }
 0x58c   : > { %p2042_p2 = pnand %p2041_p12, %p3158_p5 }
 0x58d   : > { %p2047_p11 = por %p2046_p9, %p2045_p1 }
 0x58e   : > { %p2043_p3 = pneg %p2042_p2 }
 0x58f   : > { %p2049_p13 = por %p2048_p7, %p2047_p11 }
 0x591   : > { %p2050_p4 = pnand %p2049_p13, %p2043_p3 }
 0x593   : > { %2053 = shalt.err (!%p2050_p4)
}
 0x594   : > { %s2215_s6 = smov 128   ;;  %s2216_s4 = smov 256  }
 0x595   : > { %s2217_s2 = smov 8  }
 0x596   : > { %1692 = dma.vmem_to_hbm [thread:$0]  (%p3158_p5), %s2938_s1, 1024, %s2943_s11, %s2947_s14, %s2215_s6, %s2216_s4, %s2217_s2  }
 0x597 PF: > { %s3165_s8 = sld [smem:[#allocation28_spill]]  ;;  %s3166_s28 = sld [smem:[#allocation42_spill]] }
 0x598   : > { %p1720_p8 = scmp.ge.s32.totalorder %s2198_s25, 2 }
 0x59d   : > { %s1412_s7 = sand.u32 1, %s3165_s8   ;;  %p3167_p10 = scmp.ne.s32.totalorder %s3166_s28, 0 }
 0x59e   : > { %s1413_s24 = scalar_lea.sflag [#allocation8], %s1412_s7 }
 0x59f   : > { %p1714_p0 = pnand %p1720_p8, %p3167_p10 }
 0x5a1   : > { %2133 = dma.done.wait (!%p1714_p0), %s1413_s24, 1024  }
 0x5a2   : > { %2135 = vsyncadd (!%p1714_p0), %s1413_s24, 4294966272  ;;  %s33_s25 = sadd.s32 1, %s2198_s25   ;;  %s3169_s0 = sld [smem:[#allocation29_spill]] }
 0x5a3   : > { %p2976_p6 = scmp.ge.s32.totalorder %s33_s25, 14   ;;  %s3170_s13 = sld [smem:[#allocation30_spill]] }
 0x5a4   : > { %s3171_s20 = sld [smem:[#allocation34_spill]]  ;;  %s3172_s11 = sld [smem:[#allocation35_spill]] }
 0x5a5   : > { %s3173_s21 = sld [smem:[#allocation36_spill]]  ;;  %s3174_s22 = sld [smem:[#allocation45_spill]] }
 0x5a6   : > { %s3175_s23 = sld [smem:[#allocation46_spill]]  ;;  %s3176_s24 = sld [smem:[#allocation47_spill]] }
 0x5a7   : > { %s3177_s1 = smov %s2146_s12  ;;  %s3178_s12 = smov %s2505_s30 }
 0x5a8   : > { %s3179_s14 = smov %s2158_s15  ;;  %s3180_s15 = smov %s2481_s16 }
 0x5a9   : > { %s3181_s16 = smov %s2166_s17  ;;  %s3182_s17 = smov %s2170_s18 }
 0x5aa   : > { %s3183_s18 = smov %s2471_s19  ;;  %s3184_s19 = smov %s3171_s20 }
 0x5ab   : > { %s3185_s20 = smov %s3172_s11  ;;  %32 = sbr.rel (!%p2976_p6) target bundleno = 36 (0x24), region = 114 }
 0x5b2   :  { %1418 = vsyncpa [#allocation7], 1 }
 0x5b3   :  { %1420 = vsyncpa [#allocation7 + $0x1], 1 }
 0x5b4   :  { %1421 = vsyncpa [#allocation10], 1 }
 0x5b5   :  { %1423 = vsyncpa [#allocation10 + $0x1], 1 }
 0x5b6   :  { %1424 = vsyncpa [#allocation8], 1 }
 0x5b7   :  { %1426 = vsyncpa [#allocation8 + $0x1], 1 }

</bundles_post_ra>
